<compile_context>
chip_gen: v7x
topology: tpu7x:2x2x1
jax: 0.10.0
libtpu: 0.0.40
codegen_flags: <defaults>
</compile_context>

<pallas_src>
import functools
import numpy as np
import jax
import jax.numpy as jnp
from jax.experimental import pallas as pl
from jax.experimental.pallas import tpu as pltpu


def _leaky_relu(v):
    return jnp.maximum(v, 0.2 * v)


def _encoder_a_kernel(
    xc_ref, yw_ref,
    w1_ref, b1_ref, w2_ref, b2_ref, w3_ref, b3_ref,
    g1_ref, be1_ref, g2_ref, be2_ref,
    w1y_ref, b1y_ref, w2y_ref, b2y_ref, w3y_ref, b3y_ref,
    g1y_ref, be1y_ref,
    pj_ref, pjt_ref, qb_ref, qbt_ref,
    out_ref,
    *, bn_counts, hdn, lane_pad):
    """Whole forward in one VMEM-resident invocation (shapes are tiny)."""
    bn_eps = 1e-5
    nrm_eps2 = 1e-24   # (F.normalize eps=1e-12)^2; rsqrt(max(ss, eps^2)) == 1/max(||.||, eps)

    pj = pj_ref[...]    # (BMp, m)  one-hot window-channel map (zero rows on padding)
    pjt = pjt_ref[...]  # (m, BMp)
    qb = qb_ref[...]    # (BMp, B)  one-hot batch map (zero rows on padding)
    qbt = qbt_ref[...]  # (B, BMp)

    def linear(h, w_ref, b_ref):
        return jnp.dot(h, w_ref[...], preferred_element_type=jnp.float32) + b_ref[...]

    def batchnorm(h, g_ref, be_ref, count):
        # Training-mode BatchNorm1d: channel = window index, stats over (batch, feature).
        # One fused scatter matmul for both moments, then gather back per row;
        # var = E[x^2] - mean^2.  Gamma is folded into the rsqrt scale (per-row,
        # so it cannot be folded into the next fc weight).
        rs = jnp.sum(h, axis=1, keepdims=True)                       # (BMp, 1)
        ss = jnp.sum(h * h, axis=1, keepdims=True)                   # (BMp, 1)
        mom_c = jnp.dot(pjt, jnp.concatenate([rs, ss], axis=1),
                        preferred_element_type=jnp.float32)          # (m, 2)
        mom = jnp.dot(pj, mom_c,
                      preferred_element_type=jnp.float32) * (1.0 / count)  # (BMp, 2)
        mean = mom[:, 0:1]
        var = mom[:, 1:2] - mean * mean
        scale = jax.lax.rsqrt(var + bn_eps) * g_ref[...]              # (BMp, 1)
        return (h - mean) * scale + be_ref[...]

    # ---- x branch: fc1 -> tanh -> BN1 -> fc2 -> lrelu -> BN2 -> fc3 -> lrelu
    hx = jnp.tanh(linear(xc_ref[...], w1_ref, b1_ref))
    hx = batchnorm(hx, g1_ref, be1_ref, bn_counts[0])
    hx = _leaky_relu(linear(hx, w2_ref, b2_ref))
    hx = batchnorm(hx, g2_ref, be2_ref, bn_counts[1])
    hx = _leaky_relu(linear(hx, w3_ref, b3_ref))

    # ---- y branch: fc1_y -> lrelu -> BN1_y -> fc2_y -> lrelu -> fc3_y -> lrelu
    hy = _leaky_relu(linear(yw_ref[...], w1y_ref, b1y_ref))
    hy = batchnorm(hy, g1y_ref, be1y_ref, bn_counts[2])
    hy = _leaky_relu(linear(hy, w2y_ref, b2y_ref))
    hy = _leaky_relu(linear(hy, w3y_ref, b3y_ref))

    # ---- F.normalize(dim=1): L2 over the window dim, per (batch, feature).
    # Fused for both branches: one (B,BMp)@(BMp,2h) group-sum matmul pair.
    hxy = jnp.concatenate([hx, hy], axis=1)                           # (BMp, 2h)
    sq = hxy * hxy
    gsum = jnp.dot(qbt, sq, preferred_element_type=jnp.float32)       # (B, 2h)
    ss1 = jnp.dot(qb, gsum, preferred_element_type=jnp.float32)       # (BMp, 2h)
    hxy = hxy * jax.lax.rsqrt(jnp.maximum(ss1, nrm_eps2))

    # ---- F.normalize(dim=2): per-row L2 over each branch's own feature lanes
    # (lane-masked reductions keep the slab fused and lane-dense; no slicing).
    lane = jax.lax.broadcasted_iota(jnp.int32, hxy.shape, 1)
    is_x = lane < hdn
    sq = hxy * hxy
    sx = jnp.sum(jnp.where(is_x, sq, 0.0), axis=1, keepdims=True)     # (BMp, 1)
    sy = jnp.sum(jnp.where(is_x, 0.0, sq), axis=1, keepdims=True)     # (BMp, 1)
    inv = jnp.where(is_x,
                    jax.lax.rsqrt(jnp.maximum(sx, nrm_eps2)),
                    jax.lax.rsqrt(jnp.maximum(sy, nrm_eps2)))
    hxy = hxy * inv

    # ---- single lane-dense store: [x | y | zero pad] up to a 128-lane multiple.
    if lane_pad > 0:
        hxy = jnp.concatenate(
            [hxy, jnp.zeros((hxy.shape[0], lane_pad), jnp.float32)], axis=1)
    out_ref[...] = hxy


def _build_windows(x, kernel_size):
    """positive_matrice_builder: y = sliding windows, x = complement features."""
    B, one, d = x.shape
    assert one == 1
    k = kernel_size
    m = d - k + 1
    xs = jnp.transpose(x, (0, 2, 1))[:, :, 0]                       # (B, d)
    win_idx = np.stack([np.arange(i, i + k) for i in range(m)])     # (m, k)
    comp_idx = np.stack([np.setdiff1d(np.arange(d), r) for r in win_idx])  # (m, d-k)
    yw = xs[:, win_idx]                                             # (B, m, k)
    xc = xs[:, comp_idx]                                            # (B, m, d-k)
    return yw, xc, m


def encoder_a_forward(x, params, kernel_size):
    B, _, d = x.shape
    hdn = params["w1"].shape[1]
    k = kernel_size
    yw, xc, m = _build_windows(x, k)
    BM = B * m
    BMp = ((BM + 7) // 8) * 8                 # pad rows to a sublane multiple
    OUT_W = 2 * hdn
    LANE = ((OUT_W + 127) // 128) * 128       # lane-dense single output slab
    lane_pad = LANE - OUT_W

    def pad_rows(a):
        if BMp == BM:
            return a
        return jnp.concatenate(
            [a, jnp.zeros((BMp - BM,) + a.shape[1:], a.dtype)], axis=0)

    yw2 = pad_rows(yw.reshape(BM, k))
    xc2 = pad_rows(xc.reshape(BM, d - k))

    # Thin one-hot group maps (zero rows for padding -> pads never touch stats).
    row_b = np.repeat(np.arange(B), m)
    row_j = np.tile(np.arange(m), B)
    pj_np = np.zeros((BMp, m), np.float32)
    pj_np[np.arange(BM), row_j] = 1.0
    qb_np = np.zeros((BMp, B), np.float32)
    qb_np[np.arange(BM), row_b] = 1.0
    pj = jnp.asarray(pj_np)
    pjt = jnp.asarray(pj_np.T.copy())
    qb = jnp.asarray(qb_np)
    qbt = jnp.asarray(qb_np.T.copy())

    def rowify(v):  # (m,) BN affine param -> per-row column (BMp, 1), zero on pad rows
        return pad_rows(jnp.tile(v, (B,)).reshape(BM, 1))

    inputs = (
        xc2, yw2,
        params["w1"], params["b1"], params["w2"], params["b2"],
        params["w3"], params["b3"],
        rowify(params["g1"]), rowify(params["be1"]),
        rowify(params["g2"]), rowify(params["be2"]),
        params["w1y"], params["b1y"], params["w2y"], params["b2y"],
        params["w3y"], params["b3y"],
        rowify(params["g1y"]), rowify(params["be1y"]),
        pj, pjt, qb, qbt,
    )

    # Advisory cost estimate so XLA can schedule/overlap this latency-bound call.
    lin_kn = ((d - k) * hdn + hdn * 2 * hdn + 2 * hdn * hdn
              + k * (hdn // 4) + (hdn // 4) * (hdn // 2) + (hdn // 2) * hdn)
    flops = 2 * BMp * lin_kn
    flops += 3 * 2 * (2 * m * BMp * 2)            # BN moment scatter + gather matmuls
    flops += 2 * (2 * B * BMp * 2 * hdn)          # fused dim=1 group-sum matmuls
    flops += 12 * BMp * 2 * hdn                   # elementwise streams (rough)
    transcendentals = BMp * hdn + 10 * BMp        # tanh + rsqrt streams (rough)
    bytes_accessed = sum(int(np.prod(a.shape)) * 4 for a in inputs) + BMp * LANE * 4

    kernel = functools.partial(
        _encoder_a_kernel,
        bn_counts=(float(B * hdn), float(B * 2 * hdn), float(B * (hdn // 4))),
        hdn=hdn, lane_pad=lane_pad)
    vmem = pl.BlockSpec(memory_space=pltpu.MemorySpace.VMEM)
    out = pl.pallas_call(
        kernel,
        out_shape=jax.ShapeDtypeStruct((BMp, LANE), jnp.float32),
        in_specs=[vmem] * len(inputs),
        out_specs=vmem,
        cost_estimate=pl.CostEstimate(
            flops=int(flops),
            transcendentals=int(transcendentals),
            bytes_accessed=int(bytes_accessed)),
    )(*inputs)

    xo = out[:BM, :hdn].reshape(B, m, hdn)
    yo = out[:BM, hdn:2 * hdn].reshape(B, m, hdn)
    return xo, yo


def encoder_a_reference(x, params, kernel_size):
    """Plain-JAX reference (same math, no Pallas) for a correctness check."""
    yw, xc, m = _build_windows(x, kernel_size)

    def lrelu(v):
        return jnp.where(v >= 0, v, 0.2 * v)

    def bn(h, g, b):
        mean = jnp.mean(h, axis=(0, 2), keepdims=True)
        var = jnp.mean((h - mean) ** 2, axis=(0, 2), keepdims=True)
        return (h - mean) / jnp.sqrt(var + 1e-5) * g[None, :, None] + b[None, :, None]

    def l2n(t, axis):
        n = jnp.sqrt(jnp.sum(t * t, axis=axis, keepdims=True))
        return t / jnp.maximum(n, 1e-12)

    hx = jnp.tanh(jnp.einsum("bmi,io->bmo", xc, params["w1"]) + params["b1"][0])
    hx = bn(hx, params["g1"], params["be1"])
    hx = lrelu(jnp.einsum("bmi,io->bmo", hx, params["w2"]) + params["b2"][0])
    hx = bn(hx, params["g2"], params["be2"])
    hx = lrelu(jnp.einsum("bmi,io->bmo", hx, params["w3"]) + params["b3"][0])

    hy = lrelu(jnp.einsum("bmi,io->bmo", yw, params["w1y"]) + params["b1y"][0])
    hy = bn(hy, params["g1y"], params["be1y"])
    hy = lrelu(jnp.einsum("bmi,io->bmo", hy, params["w2y"]) + params["b2y"][0])
    hy = lrelu(jnp.einsum("bmi,io->bmo", hy, params["w3y"]) + params["b3y"][0])

    hx = l2n(l2n(hx, 1), 2)
    hy = l2n(l2n(hy, 1), 2)
    return hx, hy


def init_params(key, kernel_size, hdn_size, d):
    """PyTorch Linear default init (U(+-1/sqrt(fan_in))); weights stored as (in, out).
    BN: weight=1, bias=0."""
    dk = d - kernel_size
    m = d - kernel_size + 1
    h = hdn_size

    def linear_init(k_, fan_in, fan_out):
        kw, kb = jax.random.split(k_)
        bound = 1.0 / np.sqrt(fan_in)
        w = jax.random.uniform(kw, (fan_in, fan_out), jnp.float32, -bound, bound)
        b = jax.random.uniform(kb, (1, fan_out), jnp.float32, -bound, bound)
        return w, b

    keys = jax.random.split(key, 6)
    p = {}
    p["w1"], p["b1"] = linear_init(keys[0], dk, h)
    p["w2"], p["b2"] = linear_init(keys[1], h, 2 * h)
    p["w3"], p["b3"] = linear_init(keys[2], 2 * h, h)
    p["w1y"], p["b1y"] = linear_init(keys[3], kernel_size, h // 4)
    p["w2y"], p["b2y"] = linear_init(keys[4], h // 4, h // 2)
    p["w3y"], p["b3y"] = linear_init(keys[5], h // 2, h)
    for name in ("g1", "g2", "g1y"):
        p[name] = jnp.ones((m,), jnp.float32)
    for name in ("be1", "be2", "be1y"):
        p[name] = jnp.zeros((m,), jnp.float32)
    return p


if __name__ == "__main__":
    B, d, kernel_size, hdn_size = 4, 16, 4, 32   # m = d - k + 1 = 13
    key = jax.random.PRNGKey(0)
    kx, kp = jax.random.split(key)
    x = jax.random.normal(kx, (B, 1, d), jnp.float32)
    params = init_params(kp, kernel_size, hdn_size, d)

    x_out, y_out = encoder_a_forward(x, params, kernel_size)
    jax.block_until_ready((x_out, y_out))

    m = d - kernel_size + 1
    assert x_out.shape == (B, m, hdn_size) and y_out.shape == (B, m, hdn_size)

    xr, yr = encoder_a_reference(x, params, kernel_size)
    assert jnp.allclose(x_out, xr, atol=2e-3, rtol=2e-3), "x branch mismatch"
    assert jnp.allclose(y_out, yr, atol=2e-3, rtol=2e-3), "y branch mismatch"

    # TODO(synk): BatchNorm running-stats buffer updates (training-side state
    # mutation) are not modeled; kernel reproduces training-mode batch stats.
    print("KERNEL_OK")
</pallas_src>

<mosaic_0001>
module attributes {stable_mosaic.version = 11 : i64} {
  func.func @_encoder_a_kernel(%arg0: memref<56x12xf32, #tpu.memory_space<vmem>>, %arg1: memref<56x4xf32, #tpu.memory_space<vmem>>, %arg2: memref<12x32xf32, #tpu.memory_space<vmem>>, %arg3: memref<1x32xf32, #tpu.memory_space<vmem>>, %arg4: memref<32x64xf32, #tpu.memory_space<vmem>>, %arg5: memref<1x64xf32, #tpu.memory_space<vmem>>, %arg6: memref<64x32xf32, #tpu.memory_space<vmem>>, %arg7: memref<1x32xf32, #tpu.memory_space<vmem>>, %arg8: memref<56x1xf32, #tpu.memory_space<vmem>>, %arg9: memref<56x1xf32, #tpu.memory_space<vmem>>, %arg10: memref<56x1xf32, #tpu.memory_space<vmem>>, %arg11: memref<56x1xf32, #tpu.memory_space<vmem>>, %arg12: memref<4x8xf32, #tpu.memory_space<vmem>>, %arg13: memref<1x8xf32, #tpu.memory_space<vmem>>, %arg14: memref<8x16xf32, #tpu.memory_space<vmem>>, %arg15: memref<1x16xf32, #tpu.memory_space<vmem>>, %arg16: memref<16x32xf32, #tpu.memory_space<vmem>>, %arg17: memref<1x32xf32, #tpu.memory_space<vmem>>, %arg18: memref<56x1xf32, #tpu.memory_space<vmem>>, %arg19: memref<56x1xf32, #tpu.memory_space<vmem>>, %arg20: memref<56x13xf32, #tpu.memory_space<vmem>>, %arg21: memref<13x56xf32, #tpu.memory_space<vmem>>, %arg22: memref<56x4xf32, #tpu.memory_space<vmem>>, %arg23: memref<4x56xf32, #tpu.memory_space<vmem>>, %arg24: memref<56x128xf32, #tpu.memory_space<vmem>>) attributes {dimension_semantics = [], scalar_prefetch = 0 : i64, scratch_operands = 0 : i64, tpu.core_type = #tpu.core_type<tc>} {
    %c0 = arith.constant 0 : index
    %c0_0 = arith.constant 0 : index
    %0 = vector.load %arg20[%c0, %c0_0] : memref<56x13xf32, #tpu.memory_space<vmem>>, vector<56x13xf32>
    %c0_1 = arith.constant 0 : index
    %c0_2 = arith.constant 0 : index
    %1 = vector.load %arg21[%c0_1, %c0_2] : memref<13x56xf32, #tpu.memory_space<vmem>>, vector<13x56xf32>
    %c0_3 = arith.constant 0 : index
    %c0_4 = arith.constant 0 : index
    %2 = vector.load %arg22[%c0_3, %c0_4] : memref<56x4xf32, #tpu.memory_space<vmem>>, vector<56x4xf32>
    %c0_5 = arith.constant 0 : index
    %c0_6 = arith.constant 0 : index
    %3 = vector.load %arg23[%c0_5, %c0_6] : memref<4x56xf32, #tpu.memory_space<vmem>>, vector<4x56xf32>
    %c0_7 = arith.constant 0 : index
    %c0_8 = arith.constant 0 : index
    %4 = vector.load %arg0[%c0_7, %c0_8] : memref<56x12xf32, #tpu.memory_space<vmem>>, vector<56x12xf32>
    %c0_9 = arith.constant 0 : index
    %c0_10 = arith.constant 0 : index
    %5 = vector.load %arg2[%c0_9, %c0_10] : memref<12x32xf32, #tpu.memory_space<vmem>>, vector<12x32xf32>
    %cst = arith.constant dense<0.000000e+00> : vector<56x32xf32>
    %6 = tpu.matmul %4, %5, %cst {dimension_numbers = #tpu.dot_dimension_numbers<[1], [0], [0], [1], [0, 0, 1, 1], [], []>} : vector<56x12xf32>, vector<12x32xf32>, vector<56x32xf32> -> vector<56x32xf32>
    %c0_11 = arith.constant 0 : index
    %c0_12 = arith.constant 0 : index
    %7 = vector.load %arg3[%c0_11, %c0_12] : memref<1x32xf32, #tpu.memory_space<vmem>>, vector<1x32xf32>
    %8 = vector.broadcast %7 : vector<1x32xf32> to vector<56x32xf32>
    %9 = arith.addf %6, %8 : vector<56x32xf32>
    %10 = math.tanh %9 : vector<56x32xf32>
    %cst_13 = arith.constant dense<0.000000e+00> : vector<56xf32>
    %11 = vector.multi_reduction <add>, %10, %cst_13 [1] : vector<56x32xf32> to vector<56xf32>
    %12 = vector.shape_cast %11 : vector<56xf32> to vector<56x1xf32>
    %13 = arith.mulf %10, %10 : vector<56x32xf32>
    %cst_14 = arith.constant dense<0.000000e+00> : vector<56xf32>
    %14 = vector.multi_reduction <add>, %13, %cst_14 [1] : vector<56x32xf32> to vector<56xf32>
    %15 = vector.shape_cast %14 : vector<56xf32> to vector<56x1xf32>
    %16 = tpu.concatenate %12, %15 in 1 : vector<56x1xf32>, vector<56x1xf32> -> vector<56x2xf32>
    %cst_15 = arith.constant dense<0.000000e+00> : vector<13x2xf32>
    %17 = tpu.matmul %1, %16, %cst_15 {dimension_numbers = #tpu.dot_dimension_numbers<[1], [0], [0], [1], [0, 0, 1, 1], [], []>} : vector<13x56xf32>, vector<56x2xf32>, vector<13x2xf32> -> vector<13x2xf32>
    %cst_16 = arith.constant dense<0.000000e+00> : vector<56x2xf32>
    %18 = tpu.matmul %0, %17, %cst_16 {dimension_numbers = #tpu.dot_dimension_numbers<[1], [0], [0], [1], [0, 0, 1, 1], [], []>} : vector<56x13xf32>, vector<13x2xf32>, vector<56x2xf32> -> vector<56x2xf32>
    %cst_17 = arith.constant 7.812500e-03 : f32
    %19 = vector.broadcast %cst_17 : f32 to vector<56x2xf32>
    %20 = arith.mulf %18, %19 : vector<56x2xf32>
    %21 = vector.extract_strided_slice %20 {offsets = [0, 0], sizes = [56, 1], strides = [1, 1]} : vector<56x2xf32> to vector<56x1xf32>
    %22 = vector.extract_strided_slice %20 {offsets = [0, 1], sizes = [56, 1], strides = [1, 1]} : vector<56x2xf32> to vector<56x1xf32>
    %23 = arith.mulf %21, %21 : vector<56x1xf32>
    %24 = arith.subf %22, %23 : vector<56x1xf32>
    %cst_18 = arith.constant 9.99999974E-6 : f32
    %25 = vector.broadcast %cst_18 : f32 to vector<56x1xf32>
    %26 = arith.addf %24, %25 : vector<56x1xf32>
    %27 = math.rsqrt %26 : vector<56x1xf32>
    %c0_19 = arith.constant 0 : index
    %c0_20 = arith.constant 0 : index
    %28 = vector.load %arg8[%c0_19, %c0_20] : memref<56x1xf32, #tpu.memory_space<vmem>>, vector<56x1xf32>
    %29 = arith.mulf %27, %28 : vector<56x1xf32>
    %30 = vector.broadcast %21 : vector<56x1xf32> to vector<56x32xf32>
    %31 = arith.subf %10, %30 : vector<56x32xf32>
    %32 = vector.broadcast %29 : vector<56x1xf32> to vector<56x32xf32>
    %33 = arith.mulf %31, %32 : vector<56x32xf32>
    %c0_21 = arith.constant 0 : index
    %c0_22 = arith.constant 0 : index
    %34 = vector.load %arg9[%c0_21, %c0_22] : memref<56x1xf32, #tpu.memory_space<vmem>>, vector<56x1xf32>
    %35 = vector.broadcast %34 : vector<56x1xf32> to vector<56x32xf32>
    %36 = arith.addf %33, %35 : vector<56x32xf32>
    %c0_23 = arith.constant 0 : index
    %c0_24 = arith.constant 0 : index
    %37 = vector.load %arg4[%c0_23, %c0_24] : memref<32x64xf32, #tpu.memory_space<vmem>>, vector<32x64xf32>
    %cst_25 = arith.constant dense<0.000000e+00> : vector<56x64xf32>
    %38 = tpu.matmul %36, %37, %cst_25 {dimension_numbers = #tpu.dot_dimension_numbers<[1], [0], [0], [1], [0, 0, 1, 1], [], []>} : vector<56x32xf32>, vector<32x64xf32>, vector<56x64xf32> -> vector<56x64xf32>
    %c0_26 = arith.constant 0 : index
    %c0_27 = arith.constant 0 : index
    %39 = vector.load %arg5[%c0_26, %c0_27] : memref<1x64xf32, #tpu.memory_space<vmem>>, vector<1x64xf32>
    %40 = vector.broadcast %39 : vector<1x64xf32> to vector<56x64xf32>
    %41 = arith.addf %38, %40 : vector<56x64xf32>
    %cst_28 = arith.constant 2.000000e-01 : f32
    %42 = vector.broadcast %cst_28 : f32 to vector<56x64xf32>
    %43 = arith.mulf %42, %41 : vector<56x64xf32>
    %44 = arith.maximumf %41, %43 : vector<56x64xf32>
    %cst_29 = arith.constant dense<0.000000e+00> : vector<56xf32>
    %45 = vector.multi_reduction <add>, %44, %cst_29 [1] : vector<56x64xf32> to vector<56xf32>
    %46 = vector.shape_cast %45 : vector<56xf32> to vector<56x1xf32>
    %47 = arith.mulf %44, %44 : vector<56x64xf32>
    %cst_30 = arith.constant dense<0.000000e+00> : vector<56xf32>
    %48 = vector.multi_reduction <add>, %47, %cst_30 [1] : vector<56x64xf32> to vector<56xf32>
    %49 = vector.shape_cast %48 : vector<56xf32> to vector<56x1xf32>
    %50 = tpu.concatenate %46, %49 in 1 : vector<56x1xf32>, vector<56x1xf32> -> vector<56x2xf32>
    %cst_31 = arith.constant dense<0.000000e+00> : vector<13x2xf32>
    %51 = tpu.matmul %1, %50, %cst_31 {dimension_numbers = #tpu.dot_dimension_numbers<[1], [0], [0], [1], [0, 0, 1, 1], [], []>} : vector<13x56xf32>, vector<56x2xf32>, vector<13x2xf32> -> vector<13x2xf32>
    %cst_32 = arith.constant dense<0.000000e+00> : vector<56x2xf32>
    %52 = tpu.matmul %0, %51, %cst_32 {dimension_numbers = #tpu.dot_dimension_numbers<[1], [0], [0], [1], [0, 0, 1, 1], [], []>} : vector<56x13xf32>, vector<13x2xf32>, vector<56x2xf32> -> vector<56x2xf32>
    %cst_33 = arith.constant 3.906250e-03 : f32
    %53 = vector.broadcast %cst_33 : f32 to vector<56x2xf32>
    %54 = arith.mulf %52, %53 : vector<56x2xf32>
    %55 = vector.extract_strided_slice %54 {offsets = [0, 0], sizes = [56, 1], strides = [1, 1]} : vector<56x2xf32> to vector<56x1xf32>
    %56 = vector.extract_strided_slice %54 {offsets = [0, 1], sizes = [56, 1], strides = [1, 1]} : vector<56x2xf32> to vector<56x1xf32>
    %57 = arith.mulf %55, %55 : vector<56x1xf32>
    %58 = arith.subf %56, %57 : vector<56x1xf32>
    %cst_34 = arith.constant 9.99999974E-6 : f32
    %59 = vector.broadcast %cst_34 : f32 to vector<56x1xf32>
    %60 = arith.addf %58, %59 : vector<56x1xf32>
    %61 = math.rsqrt %60 : vector<56x1xf32>
    %c0_35 = arith.constant 0 : index
    %c0_36 = arith.constant 0 : index
    %62 = vector.load %arg10[%c0_35, %c0_36] : memref<56x1xf32, #tpu.memory_space<vmem>>, vector<56x1xf32>
    %63 = arith.mulf %61, %62 : vector<56x1xf32>
    %64 = vector.broadcast %55 : vector<56x1xf32> to vector<56x64xf32>
    %65 = arith.subf %44, %64 : vector<56x64xf32>
    %66 = vector.broadcast %63 : vector<56x1xf32> to vector<56x64xf32>
    %67 = arith.mulf %65, %66 : vector<56x64xf32>
    %c0_37 = arith.constant 0 : index
    %c0_38 = arith.constant 0 : index
    %68 = vector.load %arg11[%c0_37, %c0_38] : memref<56x1xf32, #tpu.memory_space<vmem>>, vector<56x1xf32>
    %69 = vector.broadcast %68 : vector<56x1xf32> to vector<56x64xf32>
    %70 = arith.addf %67, %69 : vector<56x64xf32>
    %c0_39 = arith.constant 0 : index
    %c0_40 = arith.constant 0 : index
    %71 = vector.load %arg6[%c0_39, %c0_40] : memref<64x32xf32, #tpu.memory_space<vmem>>, vector<64x32xf32>
    %cst_41 = arith.constant dense<0.000000e+00> : vector<56x32xf32>
    %72 = tpu.matmul %70, %71, %cst_41 {dimension_numbers = #tpu.dot_dimension_numbers<[1], [0], [0], [1], [0, 0, 1, 1], [], []>} : vector<56x64xf32>, vector<64x32xf32>, vector<56x32xf32> -> vector<56x32xf32>
    %c0_42 = arith.constant 0 : index
    %c0_43 = arith.constant 0 : index
    %73 = vector.load %arg7[%c0_42, %c0_43] : memref<1x32xf32, #tpu.memory_space<vmem>>, vector<1x32xf32>
    %74 = vector.broadcast %73 : vector<1x32xf32> to vector<56x32xf32>
    %75 = arith.addf %72, %74 : vector<56x32xf32>
    %cst_44 = arith.constant 2.000000e-01 : f32
    %76 = vector.broadcast %cst_44 : f32 to vector<56x32xf32>
    %77 = arith.mulf %76, %75 : vector<56x32xf32>
    %78 = arith.maximumf %75, %77 : vector<56x32xf32>
    %c0_45 = arith.constant 0 : index
    %c0_46 = arith.constant 0 : index
    %79 = vector.load %arg1[%c0_45, %c0_46] : memref<56x4xf32, #tpu.memory_space<vmem>>, vector<56x4xf32>
    %c0_47 = arith.constant 0 : index
    %c0_48 = arith.constant 0 : index
    %80 = vector.load %arg12[%c0_47, %c0_48] : memref<4x8xf32, #tpu.memory_space<vmem>>, vector<4x8xf32>
    %cst_49 = arith.constant dense<0.000000e+00> : vector<56x8xf32>
    %81 = tpu.matmul %79, %80, %cst_49 {dimension_numbers = #tpu.dot_dimension_numbers<[1], [0], [0], [1], [0, 0, 1, 1], [], []>} : vector<56x4xf32>, vector<4x8xf32>, vector<56x8xf32> -> vector<56x8xf32>
    %c0_50 = arith.constant 0 : index
    %c0_51 = arith.constant 0 : index
    %82 = vector.load %arg13[%c0_50, %c0_51] : memref<1x8xf32, #tpu.memory_space<vmem>>, vector<1x8xf32>
    %83 = vector.broadcast %82 : vector<1x8xf32> to vector<56x8xf32>
    %84 = arith.addf %81, %83 : vector<56x8xf32>
    %cst_52 = arith.constant 2.000000e-01 : f32
    %85 = vector.broadcast %cst_52 : f32 to vector<56x8xf32>
    %86 = arith.mulf %85, %84 : vector<56x8xf32>
    %87 = arith.maximumf %84, %86 : vector<56x8xf32>
    %cst_53 = arith.constant dense<0.000000e+00> : vector<56xf32>
    %88 = vector.multi_reduction <add>, %87, %cst_53 [1] : vector<56x8xf32> to vector<56xf32>
    %89 = vector.shape_cast %88 : vector<56xf32> to vector<56x1xf32>
    %90 = arith.mulf %87, %87 : vector<56x8xf32>
    %cst_54 = arith.constant dense<0.000000e+00> : vector<56xf32>
    %91 = vector.multi_reduction <add>, %90, %cst_54 [1] : vector<56x8xf32> to vector<56xf32>
    %92 = vector.shape_cast %91 : vector<56xf32> to vector<56x1xf32>
    %93 = tpu.concatenate %89, %92 in 1 : vector<56x1xf32>, vector<56x1xf32> -> vector<56x2xf32>
    %cst_55 = arith.constant dense<0.000000e+00> : vector<13x2xf32>
    %94 = tpu.matmul %1, %93, %cst_55 {dimension_numbers = #tpu.dot_dimension_numbers<[1], [0], [0], [1], [0, 0, 1, 1], [], []>} : vector<13x56xf32>, vector<56x2xf32>, vector<13x2xf32> -> vector<13x2xf32>
    %cst_56 = arith.constant dense<0.000000e+00> : vector<56x2xf32>
    %95 = tpu.matmul %0, %94, %cst_56 {dimension_numbers = #tpu.dot_dimension_numbers<[1], [0], [0], [1], [0, 0, 1, 1], [], []>} : vector<56x13xf32>, vector<13x2xf32>, vector<56x2xf32> -> vector<56x2xf32>
    %cst_57 = arith.constant 3.125000e-02 : f32
    %96 = vector.broadcast %cst_57 : f32 to vector<56x2xf32>
    %97 = arith.mulf %95, %96 : vector<56x2xf32>
    %98 = vector.extract_strided_slice %97 {offsets = [0, 0], sizes = [56, 1], strides = [1, 1]} : vector<56x2xf32> to vector<56x1xf32>
    %99 = vector.extract_strided_slice %97 {offsets = [0, 1], sizes = [56, 1], strides = [1, 1]} : vector<56x2xf32> to vector<56x1xf32>
    %100 = arith.mulf %98, %98 : vector<56x1xf32>
    %101 = arith.subf %99, %100 : vector<56x1xf32>
    %cst_58 = arith.constant 9.99999974E-6 : f32
    %102 = vector.broadcast %cst_58 : f32 to vector<56x1xf32>
    %103 = arith.addf %101, %102 : vector<56x1xf32>
    %104 = math.rsqrt %103 : vector<56x1xf32>
    %c0_59 = arith.constant 0 : index
    %c0_60 = arith.constant 0 : index
    %105 = vector.load %arg18[%c0_59, %c0_60] : memref<56x1xf32, #tpu.memory_space<vmem>>, vector<56x1xf32>
    %106 = arith.mulf %104, %105 : vector<56x1xf32>
    %107 = vector.broadcast %98 : vector<56x1xf32> to vector<56x8xf32>
    %108 = arith.subf %87, %107 : vector<56x8xf32>
    %109 = vector.broadcast %106 : vector<56x1xf32> to vector<56x8xf32>
    %110 = arith.mulf %108, %109 : vector<56x8xf32>
    %c0_61 = arith.constant 0 : index
    %c0_62 = arith.constant 0 : index
    %111 = vector.load %arg19[%c0_61, %c0_62] : memref<56x1xf32, #tpu.memory_space<vmem>>, vector<56x1xf32>
    %112 = vector.broadcast %111 : vector<56x1xf32> to vector<56x8xf32>
    %113 = arith.addf %110, %112 : vector<56x8xf32>
    %c0_63 = arith.constant 0 : index
    %c0_64 = arith.constant 0 : index
    %114 = vector.load %arg14[%c0_63, %c0_64] : memref<8x16xf32, #tpu.memory_space<vmem>>, vector<8x16xf32>
    %cst_65 = arith.constant dense<0.000000e+00> : vector<56x16xf32>
    %115 = tpu.matmul %113, %114, %cst_65 {dimension_numbers = #tpu.dot_dimension_numbers<[1], [0], [0], [1], [0, 0, 1, 1], [], []>} : vector<56x8xf32>, vector<8x16xf32>, vector<56x16xf32> -> vector<56x16xf32>
    %c0_66 = arith.constant 0 : index
    %c0_67 = arith.constant 0 : index
    %116 = vector.load %arg15[%c0_66, %c0_67] : memref<1x16xf32, #tpu.memory_space<vmem>>, vector<1x16xf32>
    %117 = vector.broadcast %116 : vector<1x16xf32> to vector<56x16xf32>
    %118 = arith.addf %115, %117 : vector<56x16xf32>
    %cst_68 = arith.constant 2.000000e-01 : f32
    %119 = vector.broadcast %cst_68 : f32 to vector<56x16xf32>
    %120 = arith.mulf %119, %118 : vector<56x16xf32>
    %121 = arith.maximumf %118, %120 : vector<56x16xf32>
    %c0_69 = arith.constant 0 : index
    %c0_70 = arith.constant 0 : index
    %122 = vector.load %arg16[%c0_69, %c0_70] : memref<16x32xf32, #tpu.memory_space<vmem>>, vector<16x32xf32>
    %cst_71 = arith.constant dense<0.000000e+00> : vector<56x32xf32>
    %123 = tpu.matmul %121, %122, %cst_71 {dimension_numbers = #tpu.dot_dimension_numbers<[1], [0], [0], [1], [0, 0, 1, 1], [], []>} : vector<56x16xf32>, vector<16x32xf32>, vector<56x32xf32> -> vector<56x32xf32>
    %c0_72 = arith.constant 0 : index
    %c0_73 = arith.constant 0 : index
    %124 = vector.load %arg17[%c0_72, %c0_73] : memref<1x32xf32, #tpu.memory_space<vmem>>, vector<1x32xf32>
    %125 = vector.broadcast %124 : vector<1x32xf32> to vector<56x32xf32>
    %126 = arith.addf %123, %125 : vector<56x32xf32>
    %cst_74 = arith.constant 2.000000e-01 : f32
    %127 = vector.broadcast %cst_74 : f32 to vector<56x32xf32>
    %128 = arith.mulf %127, %126 : vector<56x32xf32>
    %129 = arith.maximumf %126, %128 : vector<56x32xf32>
    %130 = tpu.concatenate %78, %129 in 1 : vector<56x32xf32>, vector<56x32xf32> -> vector<56x64xf32>
    %131 = arith.mulf %130, %130 : vector<56x64xf32>
    %cst_75 = arith.constant dense<0.000000e+00> : vector<4x64xf32>
    %132 = tpu.matmul %3, %131, %cst_75 {dimension_numbers = #tpu.dot_dimension_numbers<[1], [0], [0], [1], [0, 0, 1, 1], [], []>} : vector<4x56xf32>, vector<56x64xf32>, vector<4x64xf32> -> vector<4x64xf32>
    %cst_76 = arith.constant dense<0.000000e+00> : vector<56x64xf32>
    %133 = tpu.matmul %2, %132, %cst_76 {dimension_numbers = #tpu.dot_dimension_numbers<[1], [0], [0], [1], [0, 0, 1, 1], [], []>} : vector<56x4xf32>, vector<4x64xf32>, vector<56x64xf32> -> vector<56x64xf32>
    %cst_77 = arith.constant 1.000000e-24 : f32
    %134 = vector.broadcast %cst_77 : f32 to vector<56x64xf32>
    %135 = arith.maximumf %133, %134 : vector<56x64xf32>
    %136 = math.rsqrt %135 : vector<56x64xf32>
    %137 = arith.mulf %130, %136 : vector<56x64xf32>
    %138 = tpu.iota {dimensions = array<i32: 1>} : vector<56x64xi32>
    %c32_i32 = arith.constant 32 : i32
    %139 = vector.broadcast %c32_i32 : i32 to vector<56x64xi32>
    %140 = arith.cmpi slt, %138, %139 : vector<56x64xi32>
    %141 = arith.mulf %137, %137 : vector<56x64xf32>
    %cst_78 = arith.constant 0.000000e+00 : f32
    %142 = vector.broadcast %cst_78 : f32 to vector<56x64xf32>
    %143 = arith.select %140, %141, %142 : vector<56x64xi1>, vector<56x64xf32>
    %cst_79 = arith.constant dense<0.000000e+00> : vector<56xf32>
    %144 = vector.multi_reduction <add>, %143, %cst_79 [1] : vector<56x64xf32> to vector<56xf32>
    %145 = vector.shape_cast %144 : vector<56xf32> to vector<56x1xf32>
    %cst_80 = arith.constant 0.000000e+00 : f32
    %146 = vector.broadcast %cst_80 : f32 to vector<56x64xf32>
    %147 = arith.select %140, %146, %141 : vector<56x64xi1>, vector<56x64xf32>
    %cst_81 = arith.constant dense<0.000000e+00> : vector<56xf32>
    %148 = vector.multi_reduction <add>, %147, %cst_81 [1] : vector<56x64xf32> to vector<56xf32>
    %149 = vector.shape_cast %148 : vector<56xf32> to vector<56x1xf32>
    %cst_82 = arith.constant 1.000000e-24 : f32
    %150 = vector.broadcast %cst_82 : f32 to vector<56x1xf32>
    %151 = arith.maximumf %145, %150 : vector<56x1xf32>
    %152 = math.rsqrt %151 : vector<56x1xf32>
    %cst_83 = arith.constant 1.000000e-24 : f32
    %153 = vector.broadcast %cst_83 : f32 to vector<56x1xf32>
    %154 = arith.maximumf %149, %153 : vector<56x1xf32>
    %155 = math.rsqrt %154 : vector<56x1xf32>
    %156 = vector.shape_cast %152 : vector<56x1xf32> to vector<56x1xf32>
    %157 = vector.broadcast %156 : vector<56x1xf32> to vector<56x64xf32>
    %158 = vector.shape_cast %155 : vector<56x1xf32> to vector<56x1xf32>
    %159 = vector.broadcast %158 : vector<56x1xf32> to vector<56x64xf32>
    %160 = arith.select %140, %157, %159 : vector<56x64xi1>, vector<56x64xf32>
    %161 = arith.mulf %137, %160 : vector<56x64xf32>
    %cst_84 = arith.constant 0.000000e+00 : f32
    %162 = vector.broadcast %cst_84 : f32 to vector<56x64xf32>
    %163 = tpu.concatenate %161, %162 in 1 : vector<56x64xf32>, vector<56x64xf32> -> vector<56x128xf32>
    %c0_85 = arith.constant 0 : index
    %c0_86 = arith.constant 0 : index
    %164 = vector.load %arg24[%c0_85, %c0_86] : memref<56x128xf32, #tpu.memory_space<vmem>>, vector<56x128xf32>
    tpu.vector_store %arg24[%c0_85, %c0_86], %163 {strides = array<i32>} : memref<56x128xf32, #tpu.memory_space<vmem>>, vector<56x128xf32>,
    return
  }
}

</mosaic_0001>

<bundles_post_ra>
// kernel: tpu_custom_call.1
= control target key start
LH: loop header
LB: loop body
LE: loop exit
PB: predicated region body
PF: predicated region fallthrough
CT: control target
= control target key end

     0   :  { %s4942_s0 = inlined_call_operand.vmem [shape: f32[56,12], index: 0, kind: input, shape index: {}]   ;;  %s4943_s1 = inlined_call_operand.vmem [shape: f32[56,4], index: 1, kind: input, shape index: {}]   ;;  %s4944_s2 = inlined_call_operand.vmem [shape: f32[12,32], index: 2, kind: input, shape index: {}]   ;;  %s4945_s3 = inlined_call_operand.vmem [shape: f32[1,32], index: 3, kind: input, shape index: {}]   ;;  %s4946_s4 = inlined_call_operand.vmem [shape: f32[32,64], index: 4, kind: input, shape index: {}]   ;;  %s4947_s5 = inlined_call_operand.vmem [shape: f32[1,64], index: 5, kind: input, shape index: {}]   ;;  %s4948_s6 = inlined_call_operand.vmem [shape: f32[64,32], index: 6, kind: input, shape index: {}]   ;;  %s4949_s7 = inlined_call_operand.vmem [shape: f32[1,32], index: 7, kind: input, shape index: {}]   ;;  %s4950_s8 = inlined_call_operand.vmem [shape: f32[56,1], index: 8, kind: input, shape index: {}]   ;;  %s4951_s9 = inlined_call_operand.vmem [shape: f32[56,1], index: 9, kind: input, shape index: {}]   ;;  %s4952_s10 = inlined_call_operand.vmem [shape: f32[56,1], index: 10, kind: input, shape index: {}]   ;;  %s4953_s11 = inlined_call_operand.vmem [shape: f32[56,1], index: 11, kind: input, shape index: {}]   ;;  %s4954_s12 = inlined_call_operand.vmem [shape: f32[4,8], index: 12, kind: input, shape index: {}]   ;;  %s4955_s13 = inlined_call_operand.vmem [shape: f32[1,8], index: 13, kind: input, shape index: {}]   ;;  %s4956_s14 = inlined_call_operand.vmem [shape: f32[8,16], index: 14, kind: input, shape index: {}]   ;;  %s4957_s15 = inlined_call_operand.vmem [shape: f32[1,16], index: 15, kind: input, shape index: {}]   ;;  %s4958_s16 = inlined_call_operand.vmem [shape: f32[16,32], index: 16, kind: input, shape index: {}]   ;;  %s4959_s17 = inlined_call_operand.vmem [shape: f32[1,32], index: 17, kind: input, shape index: {}]   ;;  %s4960_s18 = inlined_call_operand.vmem [shape: f32[56,1], index: 18, kind: input, shape index: {}]   ;;  %s4961_s19 = inlined_call_operand.vmem [shape: f32[56,1], index: 19, kind: input, shape index: {}]   ;;  %s4962_s20 = inlined_call_operand.vmem [shape: f32[56,13], index: 20, kind: input, shape index: {}]   ;;  %s4963_s21 = inlined_call_operand.vmem [shape: f32[13,56], index: 21, kind: input, shape index: {}]   ;;  %s4964_s22 = inlined_call_operand.vmem [shape: f32[56,4], index: 22, kind: input, shape index: {}]   ;;  %s4965_s23 = inlined_call_operand.vmem [shape: f32[4,56], index: 23, kind: input, shape index: {}]   ;;  %s4966_s24 = inlined_call_operand.hbm [shape: f32[56,128], index: 24, kind: output, shape index: {}]  }
   0x1   :  { %4973 = sst [smem:[#allocation5_spill]] %s4942_s0 }
   0x2   :  { %4974 = sst [smem:[#allocation6_spill]] %s4943_s1 }
   0x3   :  { %4975 = sst [smem:[#allocation7_spill]] %s4944_s2 }
   0x4   :  { %4976 = sst [smem:[#allocation8_spill]] %s4945_s3 }
   0x5   :  { %4977 = sst [smem:[#allocation9_spill]] %s4946_s4 }
   0x6   :  { %4978 = sst [smem:[#allocation10_spill]] %s4947_s5 }
   0x7   :  { %4979 = sst [smem:[#allocation11_spill]] %s4948_s6 }
   0x8   :  { %4980 = sst [smem:[#allocation12_spill]] %s4949_s7 }
   0x9   :  { %4981 = sst [smem:[#allocation13_spill]] %s4950_s8 }
   0xa   :  { %s4982_s27 = sld [smem:[#allocation7_spill]]  ;;  %vm133_vm0 = vcmask 1043456   ;;  %v3623_v2 = vmov 0.0|0.0   ;;  %vm3624_vm1 = vmmov 1   ;;  %vm3625_vm3 = vmmov 0   ;;  %s4983_s0 = sld [smem:[#allocation5_spill]] }
   0xb   :  { %3377 = vmatprep.subr.bf16.mxu0 %v3623_v2  ;;  %vm3379_vm2 = vmpackc.low %vm133_vm0, %vm3624_vm1  ;;  %3393 = vmatprep.subr.bf16.mxu1 %v3623_v2  ;;  %v3626_v4 = vmov 0.0   ;;  %vm111_vm4 = vcmask 97280  }
   0xc   :  { %3053 = vmatprep.mubr.msk.f32.mxu0 %vm3625_vm3, %v3626_v4  ;;  %3095 = vmatprep.mubr.msk.f32.mxu1 %vm3625_vm3, %v3626_v4 }
  0x10   :  { %v102_v0 = vld [vmem:[%s4982_s27] sm:$0xff]  ;;  %v103_v1 = vld [vmem:[%s4982_s27 + $0x8] sm:$0xf] }
  0x11   :  { %v3378_v3 = vpack.c.bf16 %v103_v1, %v102_v0  ;;  %v95_v5 = vld [vmem:[%s4983_s0] sm:$0xff] }
  0x13   :  { %3380 = vmatpush3.bf16.msk.msra.mxu0 %vm3379_vm2, %v3378_v3 }
  0x14   :  { %29 = vsyncpa [#allocation3], 0  ;;  %v96_v6 = vld [vmem:[%s4983_s0 + $0x8] sm:$0xff]  ;;  %v97_v7 = vld [vmem:[%s4983_s0 + $0x10] sm:$0xff]  ;;  %s4984_s7 = sld [smem:[#allocation8_spill]]  ;;  %vm244_vm5 = vcmask 261120  }
  0x15   :  { %v98_v8 = vld [vmem:[%s4983_s0 + $0x18] sm:$0xff]  ;;  %v99_v9 = vld [vmem:[%s4983_s0 + $0x20] sm:$0xff]  ;;  %v100_v10 = vld [vmem:[%s4983_s0 + $0x28] sm:$0xff]  ;;  %vm302_vm6 = vcmask 457728   ;;  %vm294_vm7 = vcmask 7168   ;;  %vm406_vm8 = vcmask 1044480  }
  0x16   :  { %3054 = vmatmul.mubr.msk.f32.vlgmr.msra.gmra.mrb[0].mxu0 %vm111_vm4, %v95_v5  ;;  %v101_v11 = vld [vmem:[%s4983_s0 + $0x30] sm:$0xff]  ;;  %v3868_v62 = vld [vmem:[%s4963_s21] sm:$0xff]  ;;  %vm3890_vm9 = vmpackc.low %vm406_vm8, %vm3624_vm1  ;;  %vm384_vm10 = vcmask 105472   ;;  %s3628_s25 = smov 1   ;;  %s4987_s1 = sld [smem:[#allocation13_spill]]  ;;  %vm894_vm11 = vcmask 523264  }
  0x17   :  { %3056 = vmatprep.mubr.msk.f32.mxu0 %vm3625_vm3, %v3626_v4  ;;  %s4988_s3 = sld [smem:[#allocation9_spill]]  ;;  %s4989_s0 = sld [smem:[#allocation10_spill]]  ;;  %vm1532_vm12 = vcmask 31744   ;;  %vm1671_vm13 = vcmask 64512   ;;  %vm2296_vm14 = vcmask 130048  }
  0x18   :  { %s3630_s5 = smov 32  }
  0x1a   :  { %3057 = vmatmul.mubr.msk.f32.gmra.mrb[2].mxu0 %vm111_vm4, %v96_v6  ;;  %v2830_v12 = vld [vmem:[%s4984_s7] ss:$0 sm:$0xff]  ;;  %s4990_s7 = sld [smem:[#allocation6_spill]] }
  0x1b   :  { %3059 = vmatprep.mubr.msk.f32.mxu0 %vm3625_vm3, %v3626_v4 }
  0x1e   :  { %3060 = vmatmul.mubr.msk.f32.gmra.mrb[4].mxu0 %vm111_vm4, %v97_v7 }
  0x1f   :  { %3062 = vmatprep.mubr.msk.f32.mxu0 %vm3625_vm3, %v3626_v4 }
  0x22   :  { %3063 = vmatmul.mubr.msk.f32.gmra.mrb[6].mxu0 %vm111_vm4, %v98_v8 }
  0x23   :  { %3065 = vmatprep.mubr.msk.f32.mxu0 %vm3625_vm3, %v3626_v4 }
  0x26   :  { %3066 = vmatmul.mubr.msk.f32.gmra.mrb[8].mxu0 %vm111_vm4, %v99_v9 }
  0x27   :  { %3068 = vmatprep.mubr.msk.f32.mxu0 %vm3625_vm3, %v3626_v4 }
  0x2a   :  { %3069 = vmatmul.mubr.msk.f32.gmra.mrb[10].mxu0 %vm111_vm4, %v100_v10 }
  0x2b   :  { %3071 = vmatprep.mubr.msk.f32.mxu0 %vm3625_vm3, %v3626_v4 }
  0x2e   :  { %3072 = vmatmul.mubr.msk.f32.gmra.mrb[12].mxu0 %vm111_vm4, %v101_v11 }
  0x2f   :  { %3088 = vmatprep.mubr.msk.f32.mxu0 %vm302_vm6, %v3868_v62 }
  0xe9   :  { %v203_v13 = vpop.f32.mrb[0].mxu0 }
  0xea   :  { %v204_v14 = vadd.f32 %v2830_v12, %v203_v13  ;;  %v3055_v15 = vpop.f32.mrb[1].mxu0 }
  0xec   :  { %3492 = vtanh.f32 %v204_v14 }
  0xed   :  { %v208_v16 = vpop.f32.mrb[2].mxu0 }
  0xee   :  { %v209_v17 = vadd.f32 %v2830_v12, %v208_v16  ;;  %v3058_v18 = vpop.f32.mrb[3].mxu0 }
  0xf0   :  { %3494 = vtanh.f32 %v209_v17 }
  0xf1   :  { %v213_v19 = vpop.f32.mrb[4].mxu0 }
  0xf2   :  { %v214_v20 = vadd.f32 %v2830_v12, %v213_v19  ;;  %v3061_v21 = vpop.f32.mrb[5].mxu0 }
  0xf4   :  { %3496 = vtanh.f32 %v214_v20 }
  0xf5   :  { %v218_v22 = vpop.f32.mrb[6].mxu0 }
  0xf6   :  { %v3816_v23 = vpop.eup %3492  ;;  %v219_v24 = vadd.f32 %v2830_v12, %v218_v22  ;;  %v3064_v25 = vpop.f32.mrb[7].mxu0 }
  0xf7   :  { %v245_v26 = vsel %vm244_vm5, %v3816_v23, 0.0  ;;  %v266_v27 = vmul.f32 %v3816_v23, %v3816_v23 }
  0xf8   :  { %3498 = vtanh.f32 %v219_v24  ;;  %246 = vadd.xlane.f32.xlu0 %v245_v26  ;;  %v3882_v26 = vld [vmem:[%s4963_s21 + $0x8] sm:$0x1f] }
  0xf9   :  { %v223_v28 = vpop.f32.mrb[8].mxu0  ;;  %v273_v29 = vsel %vm244_vm5, %v266_v27, 0.0 }
  0xfa   :  { %v3823_v30 = vpop.eup %3494  ;;  %v224_v31 = vadd.f32 %v2830_v12, %v223_v28  ;;  %274 = vadd.xlane.f32.xlu1 %v273_v29  ;;  %v3067_v32 = vpop.f32.mrb[9].mxu0  ;;  %v3594_v29 = vld [vmem:[%s4962_s20 + $0x10] sm:$0xff] }
  0xfb   :  { %v248_v33 = vsel %vm244_vm5, %v3823_v30, 0.0  ;;  %v267_v34 = vmul.f32 %v3823_v30, %v3823_v30  ;;  %v3899_v32 = vld [vmem:[%s4962_s20] sm:$0xff] }
  0xfc   :  { %3500 = vtanh.f32 %v224_v31  ;;  %249 = vadd.xlane.f32.xlu0 %v248_v33  ;;  %v3908_v33 = vld [vmem:[%s4962_s20 + $0x8] sm:$0xff] }
  0xfd   :  { %v228_v35 = vpop.f32.mrb[10].mxu0  ;;  %v276_v36 = vsel %vm244_vm5, %v267_v34, 0.0  ;;  %v3917_v34 = vld [vmem:[%s4962_s20 + $0x10] sm:$0xff] }
  0xfe   :  { %v3830_v37 = vpop.eup %3496  ;;  %v229_v38 = vadd.f32 %v2830_v12, %v228_v35  ;;  %277 = vadd.xlane.f32.xlu1 %v276_v36  ;;  %v3070_v39 = vpop.f32.mrb[11].mxu0  ;;  %v3926_v35 = vld [vmem:[%s4962_s20 + $0x18] sm:$0xff]  ;;  %v3935_v36 = vld [vmem:[%s4962_s20 + $0x20] sm:$0xff] }
  0xff   :  { %v251_v40 = vsel %vm244_vm5, %v3830_v37, 0.0  ;;  %v268_v41 = vmul.f32 %v3830_v37, %v3830_v37  ;;  %v3953_v39 = vld [vmem:[%s4962_s20 + $0x30] sm:$0xff] }
 0x100   :  { %3502 = vtanh.f32 %v229_v38  ;;  %252 = vadd.xlane.f32.xlu0 %v251_v40  ;;  %v3944_v38 = vld [vmem:[%s4962_s20 + $0x28] sm:$0xff]  ;;  %v3627_v40 = vmov 0  }
 0x101   :  { %v233_v42 = vpop.f32.mrb[12].mxu0  ;;  %v279_v46 = vsel %vm244_vm5, %v268_v41, 0.0  ;;  %3470 = vset.pattern.permute.xlu0 %v3627_v40  ;;  %3471 = vset.pattern.permute.xlu1 %v3627_v40 }
 0x102   :  { %v3836_v43 = vpop.eup %3498  ;;  %v234_v44 = vadd.f32 %v2830_v12, %v233_v42  ;;  %v3073_v45 = vpop.f32.mrb[13].mxu0 }
 0x103   :  { %v254_v47 = vsel %vm244_vm5, %v3836_v43, 0.0  ;;  %v269_v48 = vmul.f32 %v3836_v43, %v3836_v43 }
 0x104   :  { %3504 = vtanh.f32 %v234_v44  ;;  %280 = vadd.xlane.f32.xlu0 %v279_v46  ;;  %255 = vadd.xlane.f32.xlu1 %v254_v47 }
 0x105   :  { %v282_v50 = vsel %vm244_vm5, %v269_v48, 0.0 }
 0x106   :  { %v3843_v49 = vpop.eup %3500 }
 0x107   :  { %v257_v51 = vsel %vm244_vm5, %v3843_v49, 0.0  ;;  %v270_v52 = vmul.f32 %v3843_v49, %v3843_v49 }
 0x108   :  { %283 = vadd.xlane.f32.xlu1 %v282_v50  ;;  %258 = vadd.xlane.f32.xlu0 %v257_v51  ;;  %v573_v50 = vld [vmem:[%s4987_s1] sm:$0xff] }
 0x109   :  { %v285_v54 = vsel %vm244_vm5, %v270_v52, 0.0 }
 0x10a   :  { %v3850_v53 = vpop.eup %3502 }
 0x10b   :  { %v260_v55 = vsel %vm244_vm5, %v3850_v53, 0.0  ;;  %v271_v56 = vmul.f32 %v3850_v53, %v3850_v53 }
 0x10c   :  { %286 = vadd.xlane.f32.xlu0 %v285_v54  ;;  %261 = vadd.xlane.f32.xlu1 %v260_v55 }
 0x10d   :  { %v288_v58 = vsel %vm244_vm5, %v271_v56, 0.0  ;;  %v574_v56 = vld [vmem:[%s4987_s1 + $0x8] sm:$0xff] }
 0x10e   :  { %v3857_v57 = vpop.eup %3504 }
 0x10f   :  { %v272_v59 = vmul.f32 %v3857_v57, %v3857_v57  ;;  %v263_v60 = vsel %vm244_vm5, %v3857_v57, 0.0 }
 0x110   :  { %289 = vadd.xlane.f32.xlu1 %v288_v58  ;;  %264 = vadd.xlane.f32.xlu0 %v263_v60 }
 0x111   :  { %v291_v61 = vsel %vm244_vm5, %v272_v59, 0.0 }
 0x114   :  { %292 = vadd.xlane.f32.xlu1 %v291_v61 }
 0x185   :  { %v247_v63 = vpop.xlane.xlu0 %246 }
 0x187   :  { %v275_v0 = vpop.xlane.xlu1 %274 }
 0x188   :  { %v295_v5 = vsel %vm294_vm7, %v247_v63, %v275_v0 }
 0x189   :  { %v250_v1 = vpop.xlane.xlu0 %249 }
 0x18b   :  { %v278_v3 = vpop.xlane.xlu1 %277 }
 0x18c   :  { %v296_v6 = vsel %vm294_vm7, %v250_v1, %v278_v3 }
 0x18d   :  { %v3381_v7 = vpack.c.bf16 %v296_v6, %v295_v5  ;;  %v253_v8 = vpop.xlane.xlu0 %252  ;;  %v576_v5 = vld [vmem:[%s4987_s1 + $0x18] sm:$0xff] }
 0x18f   :  { %3382 = vmatprep.subr.bf16.mxu0 %v3381_v7 }
 0x190   :  { %3384 = vmatpush3.bf16.msra.mxu0 %v3381_v7 }
 0x191   :  { %v281_v9 = vpop.xlane.xlu0 %280  ;;  %v256_v10 = vpop.xlane.xlu1 %255 }
 0x192   :  { %v297_v13 = vsel %vm294_vm7, %v253_v8, %v281_v9 }
 0x195   :  { %v284_v11 = vpop.xlane.xlu1 %283  ;;  %v259_v12 = vpop.xlane.xlu0 %258 }
 0x196   :  { %v298_v14 = vsel %vm294_vm7, %v256_v10, %v284_v11  ;;  %v578_v10 = vld [vmem:[%s4987_s1 + $0x28] sm:$0xff] }
 0x197   :  { %v3385_v15 = vpack.c.bf16 %v298_v14, %v297_v13 }
 0x199   :  { %3386 = vmatprep.subr.bf16.mxu0 %v3385_v15  ;;  %v262_v16 = vpop.xlane.xlu1 %261  ;;  %v287_v17 = vpop.xlane.xlu0 %286 }
 0x19a   :  { %3388 = vmatpush3.bf16.msra.mxu0 %v3385_v15  ;;  %v299_v19 = vsel %vm294_vm7, %v259_v12, %v287_v17  ;;  %v577_v17 = vld [vmem:[%s4987_s1 + $0x20] sm:$0xff] }
 0x19d   :  { %v290_v18 = vpop.xlane.xlu1 %289  ;;  %v265_v22 = vpop.xlane.xlu0 %264 }
 0x19e   :  { %v300_v20 = vsel %vm294_vm7, %v262_v16, %v290_v18  ;;  %v699_v16 = vld [vmem:[%s4951_s9] sm:$0xff]  ;;  %v579_v18 = vld [vmem:[%s4987_s1 + $0x30] sm:$0xff] }
 0x19f   :  { %v3389_v21 = vpack.c.bf16 %v300_v20, %v299_v19  ;;  %v702_v19 = vld [vmem:[%s4951_s9 + $0x18] sm:$0xff]  ;;  %v700_v20 = vld [vmem:[%s4951_s9 + $0x8] sm:$0xff] }
 0x1a1   :  { %3390 = vmatprep.subr.bf16.mxu0 %v3389_v21  ;;  %v293_v24 = vpop.xlane.xlu1 %292 }
 0x1a2   :  { %3392 = vmatpush3.bf16.msra.mxu0 %v3389_v21  ;;  %v301_v25 = vsel %vm294_vm7, %v265_v22, %v293_v24  ;;  %v703_v21 = vld [vmem:[%s4951_s9 + $0x20] sm:$0xff]  ;;  %v3629_v22 = vmov 1   ;;  %v701_v24 = vld [vmem:[%s4951_s9 + $0x10] sm:$0xff] }
 0x1a3   :  { %3086 = vmatprep.subr.mxu0 %v301_v25 }
 0x1a6   :  { %3087 = vmatpush3.msra.mxu0 %v301_v25  ;;  %v748_v25 = vld [vmem:[%s4988_s3] sm:$0xff] }
 0x1a7   :  { %3089 = vmatmul.mubr.msk.f32.vlgmr.msra.gmra.mrb[14].mxu0 %vm302_vm6, %v3882_v26  ;;  %3397 = vmatprep.subr.bf16.mxu0 %v3623_v2 }
 0x1a8   :  { %3124 = vmatprep.mubr.msk.f32.mxu0 %vm3625_vm3, %v3626_v4 }
 0x27a   :  { %v3090_v27 = vpop.f32.mrb[14].mxu0 }
 0x27b   :  { %v375_v28 = vpop.f32.mrb[15].mxu0 }
 0x27c   :  { %v3394_v31 = vpack.c.bf16 %v3090_v27, %v375_v28  ;;  %v749_v27 = vld [vmem:[%s4988_s3 + $0x8] sm:$0xff] }
 0x27d   :  { %v3398_v28 = vpack.c.bf16 %v749_v27, %v748_v25  ;;  %v704_v25 = vld [vmem:[%s4951_s9 + $0x28] sm:$0xff] }
 0x27e   :  { %3396 = vmatpush3.bf16.msk.msra.mxu1 %vm3890_vm9, %v3394_v31 }
 0x27f   :  { %3399 = vmatpush3.bf16.msra.mxu0 %v3398_v28 }
 0x280   :  { %3400 = vmatprep.subr.bf16.mxu0 %v3623_v2 }
 0x281   :  { %3096 = vmatmul.mubr.msk.f32.vlgmr.msra.gmra.mrb[0].mxu1 %vm384_vm10, %v3899_v32 }
 0x282   :  { %3098 = vmatprep.mubr.msk.f32.mxu1 %vm3625_vm3, %v3626_v4 }
 0x285   :  { %3099 = vmatmul.mubr.msk.f32.gmra.mrb[2].mxu1 %vm384_vm10, %v3908_v33 }
 0x286   :  { %3101 = vmatprep.mubr.msk.f32.mxu1 %vm3625_vm3, %v3626_v4 }
 0x289   :  { %3102 = vmatmul.mubr.msk.f32.gmra.mrb[4].mxu1 %vm384_vm10, %v3917_v34 }
 0x28a   :  { %3104 = vmatprep.mubr.msk.f32.mxu1 %vm3625_vm3, %v3626_v4 }
 0x28d   :  { %3105 = vmatmul.mubr.msk.f32.gmra.mrb[6].mxu1 %vm384_vm10, %v3926_v35 }
 0x28e   :  { %3107 = vmatprep.mubr.msk.f32.mxu1 %vm3625_vm3, %v3626_v4 }
 0x291   :  { %3108 = vmatmul.mubr.msk.f32.gmra.mrb[8].mxu1 %vm384_vm10, %v3935_v36 }
 0x292   :  { %3110 = vmatprep.mubr.msk.f32.mxu1 %vm3625_vm3, %v3626_v4 }
 0x295   :  { %3111 = vmatmul.mubr.msk.f32.gmra.mrb[10].mxu1 %vm384_vm10, %v3944_v38 }
 0x296   :  { %3113 = vmatprep.mubr.msk.f32.mxu1 %vm3625_vm3, %v3626_v4 }
 0x299   :  { %3114 = vmatmul.mubr.msk.f32.gmra.mrb[12].mxu1 %vm384_vm10, %v3953_v39 }
 0x29a   :  { %3159 = vmatprep.mubr.msk.f32.mxu1 %vm302_vm6, %v3868_v62  ;;  %v575_v62 = vld [vmem:[%s4987_s1 + $0x10] sm:$0xff] }
 0x354   :  { %v476_v41 = vpop.f32.mrb[0].mxu1 }
 0x355   :  { %v3961_v42 = vmul.f32 0.0078125, %v476_v41  ;;  %v3097_v44 = vpop.f32.mrb[1].mxu1 }
 0x357   :  { %v517_v45 = vmul.f32 %v3961_v42, %v3961_v42 }
 0x358   :  { %v481_v46 = vpop.f32.mrb[2].mxu1 }
 0x359   :  { %v3965_v47 = vmul.f32 0.0078125, %v481_v46  ;;  %531 = vrot.lane.b32.xlu0 %v517_v45, %s3628_s25  ;;  %v3100_v48 = vpop.f32.mrb[3].mxu1 }
 0x35b   :  { %v518_v51 = vmul.f32 %v3965_v47, %v3965_v47 }
 0x35c   :  { %v486_v52 = vpop.f32.mrb[4].mxu1 }
 0x35d   :  { %v3973_v54 = vmul.f32 0.0078125, %v486_v52  ;;  %587 = vrot.lane.b32.xlu0 %v573_v50, %s3628_s25  ;;  %533 = vrot.lane.b32.xlu1 %v518_v51, %s3628_s25  ;;  %v3103_v55 = vpop.f32.mrb[5].mxu1 }
 0x35f   :  { %v519_v58 = vmul.f32 %v3973_v54, %v3973_v54 }
 0x360   :  { %v491_v59 = vpop.f32.mrb[6].mxu1 }
 0x361   :  { %v3982_v60 = vmul.f32 0.0078125, %v491_v59  ;;  %589 = vrot.lane.b32.xlu0 %v574_v56, %s3628_s25  ;;  %535 = vrot.lane.b32.xlu1 %v519_v58, %s3628_s25  ;;  %v3106_v61 = vpop.f32.mrb[7].mxu1 }
 0x363   :  { %v520_v63 = vmul.f32 %v3982_v60, %v3982_v60 }
 0x364   :  { %v496_v0 = vpop.f32.mrb[8].mxu1 }
 0x365   :  { %v3991_v1 = vmul.f32 0.0078125, %v496_v0  ;;  %591 = vrot.lane.b32.xlu0 %v575_v62, %s3628_s25  ;;  %537 = vrot.lane.b32.xlu1 %v520_v63, %s3628_s25  ;;  %v3109_v3 = vpop.f32.mrb[9].mxu1  ;;  %v751_v0 = vld [vmem:[%s4988_s3 + $0x18] sm:$0xff] }
 0x367   :  { %v521_v6 = vmul.f32 %v3991_v1, %v3991_v1 }
 0x368   :  { %v501_v7 = vpop.f32.mrb[10].mxu1 }
 0x369   :  { %v4000_v8 = vmul.f32 0.0078125, %v501_v7  ;;  %593 = vrot.lane.b32.xlu0 %v576_v5, %s3628_s25  ;;  %539 = vrot.lane.b32.xlu1 %v521_v6, %s3628_s25  ;;  %v3112_v9 = vpop.f32.mrb[11].mxu1 }
 0x36b   :  { %v522_v11 = vmul.f32 %v4000_v8, %v4000_v8 }
 0x36c   :  { %v506_v12 = vpop.f32.mrb[12].mxu1 }
 0x36d   :  { %v4009_v13 = vmul.f32 0.0078125, %v506_v12  ;;  %597 = vrot.lane.b32.xlu0 %v578_v10, %s3628_s25  ;;  %541 = vrot.lane.b32.xlu1 %v522_v11, %s3628_s25  ;;  %v3115_v14 = vpop.f32.mrb[13].mxu1 }
 0x36f   :  { %v523_v15 = vmul.f32 %v4009_v13, %v4009_v13 }
 0x371   :  { %617 = vperm.xlu0 %3470, %v3961_v42   ;;  %543 = vrot.lane.b32.xlu1 %v523_v15, %s3628_s25 }
 0x375   :  { %708 = vperm.xlu0 %3470, %v699_v16   ;;  %595 = vrot.lane.b32.xlu1 %v577_v17, %s3628_s25 }
 0x379   :  { %627 = vperm.xlu0 %3470, %v3973_v54   ;;  %599 = vrot.lane.b32.xlu1 %v579_v18, %s3628_s25 }
 0x37d   :  { %622 = vperm.xlu1 %3471, %v3965_v47   ;;  %723 = vperm.xlu0 %3470, %v702_v19  }
 0x381   :  { %713 = vperm.xlu1 %3471, %v700_v20   ;;  %728 = vperm.xlu0 %3470, %v703_v21  }
 0x385   :  { %632 = vperm.xlu1 %3471, %v3982_v60   ;;  %3474 = vset.pattern.permute.xlu0 %v3629_v22 }
 0x389   :  { %718 = vperm.xlu1 %3471, %v701_v24  }
 0x38d   :  { %3472 = vset.pattern.permute.xlu1 %v3629_v22 }
 0x3cb   :  { %v532_v31 = vpop.permute.xlu0 %531 }
 0x3cc   :  { %v552_v41 = vsub.f32 %v3961_v42, %v532_v31 }
 0x3ce   :  { %v559_v44 = vadd.f32 1e-05, %v552_v41 }
 0x3cf   :  { %v534_v45 = vpop.permute.xlu1 %533  ;;  %v588_v50 = vpop.permute.xlu0 %587 }
 0x3d0   :  { %3506 = vrsqrt.f32 %v559_v44  ;;  %v553_v46 = vsub.f32 %v3965_v47, %v534_v45  ;;  %v750_v47 = vld [vmem:[%s4988_s3 + $0x10] sm:$0xff] }
 0x3d1   :  { %v3401_v3 = vpack.c.bf16 %v751_v0, %v750_v47  ;;  %v705_v45 = vld [vmem:[%s4951_s9 + $0x30] sm:$0xff]  ;;  %s4991_s9 = sld [smem:[#allocation11_spill]] }
 0x3d2   :  { %v560_v48 = vadd.f32 1e-05, %v553_v46 }
 0x3d3   :  { %v536_v51 = vpop.permute.xlu1 %535  ;;  %v590_v59 = vpop.permute.xlu0 %589  ;;  %3402 = vmatpush3.bf16.msra.mxu0 %v3401_v3 }
 0x3d4   :  { %3508 = vrsqrt.f32 %v560_v48  ;;  %v554_v52 = vsub.f32 %v3973_v54, %v536_v51  ;;  %3419 = vmatprep.subr.bf16.mxu0 %v3623_v2 }
 0x3d6   :  { %v561_v55 = vadd.f32 1e-05, %v554_v52 }
 0x3d7   :  { %v538_v56 = vpop.permute.xlu1 %537  ;;  %v592_v6 = vpop.permute.xlu0 %591 }
 0x3d8   :  { %3510 = vrsqrt.f32 %v561_v55  ;;  %v555_v58 = vsub.f32 %v3982_v60, %v538_v56 }
 0x3da   :  { %v3507_v61 = vpop.eup %3506  ;;  %v562_v62 = vadd.f32 1e-05, %v555_v58 }
 0x3db   :  { %v608_v42 = vmul.f32 %v3507_v61, %v588_v50  ;;  %v540_v63 = vpop.permute.xlu1 %539  ;;  %v594_v17 = vpop.permute.xlu0 %593 }
 0x3dc   :  { %3512 = vrsqrt.f32 %v562_v62  ;;  %v556_v54 = vsub.f32 %v3991_v1, %v540_v63 }
 0x3dd   :  { %659 = vperm.xlu1 %3472, %v608_v42  }
 0x3de   :  { %v3509_v5 = vpop.eup %3508  ;;  %v563_v60 = vadd.f32 1e-05, %v556_v54 }
 0x3df   :  { %v609_v7 = vmul.f32 %v3509_v5, %v590_v59  ;;  %v542_v9 = vpop.permute.xlu1 %541 }
 0x3e0   :  { %3514 = vrsqrt.f32 %v563_v60  ;;  %v557_v10 = vsub.f32 %v4000_v8, %v542_v9 }
 0x3e1   :  { %664 = vperm.xlu1 %3472, %v609_v7  }
 0x3e2   :  { %v3511_v11 = vpop.eup %3510  ;;  %v564_v12 = vadd.f32 1e-05, %v557_v10 }
 0x3e3   :  { %v610_v14 = vmul.f32 %v3511_v11, %v592_v6  ;;  %v544_v15 = vpop.permute.xlu1 %543 }
 0x3e4   :  { %3516 = vrsqrt.f32 %v564_v12  ;;  %v558_v16 = vsub.f32 %v4009_v13, %v544_v15 }
 0x3e5   :  { %669 = vperm.xlu0 %3474, %v610_v14   ;;  %3473 = vset.pattern.permute.xlu1 %v3627_v40 }
 0x3e6   :  { %v3513_v18 = vpop.eup %3512  ;;  %v565_v19 = vadd.f32 1e-05, %v558_v16  ;;  %637 = vperm.xlu1 %3473, %v3991_v1   ;;  %v598_v1 = vpop.permute.xlu0 %597 }
 0x3e7   :  { %v611_v20 = vmul.f32 %v3513_v18, %v594_v17  ;;  %v596_v24 = vpop.permute.xlu1 %595 }
 0x3e8   :  { %3518 = vrsqrt.f32 %v565_v19 }
 0x3e9   :  { %674 = vperm.xlu0 %3474, %v611_v20  }
 0x3ea   :  { %v3515_v21 = vpop.eup %3514  ;;  %642 = vperm.xlu1 %3473, %v4000_v8  }
 0x3eb   :  { %v612_v27 = vmul.f32 %v3515_v21, %v596_v24  ;;  %v600_v31 = vpop.permute.xlu1 %599 }
 0x3ed   :  { %3475 = vset.pattern.permute.xlu0 %v3627_v40 }
 0x3ee   :  { %v3517_v28 = vpop.eup %3516  ;;  %3476 = vset.pattern.permute.xlu1 %v3629_v22  ;;  %733 = vperm.xlu0 %3475, %v704_v25  }
 0x3ef   :  { %679 = vperm.xlu1 %3476, %v612_v27   ;;  %v613_v41 = vmul.f32 %v3517_v28, %v598_v1  ;;  %v2849_v27 = vld [vmem:[%s4989_s0] ss:$0 sm:$0xff] }
 0x3f0   :  { %v618_v48 = vpop.permute.xlu0 %617 }
 0x3f1   :  { %v650_v59 = vsub.f32 %v3816_v23, %v618_v48 }
 0x3f2   :  { %v3519_v44 = vpop.eup %3518  ;;  %3478 = vset.pattern.permute.xlu0 %v3629_v22 }
 0x3f3   :  { %v614_v8 = vmul.f32 %v3519_v44, %v600_v31  ;;  %684 = vperm.xlu1 %3476, %v613_v41  }
 0x3f4   :  { %v709_v51 = vpop.permute.xlu0 %708 }
 0x3f5   :  { %689 = vperm.xlu0 %3478, %v614_v8  }
 0x3f7   :  { %3477 = vset.pattern.permute.xlu1 %v3627_v40 }
 0x3f8   :  { %647 = vperm.xlu1 %3477, %v4009_v13   ;;  %v628_v55 = vpop.permute.xlu0 %627 }
 0x3f9   :  { %3479 = vset.pattern.permute.xlu0 %v3627_v40  ;;  %v652_v54 = vsub.f32 %v3830_v37, %v628_v55 }
 0x3fc   :  { %738 = vperm.xlu1 %3477, %v705_v45   ;;  %v623_v46 = vpop.permute.xlu1 %622  ;;  %v724_v58 = vpop.permute.xlu0 %723 }
 0x3fd   :  { %v651_v13 = vsub.f32 %v3823_v30, %v623_v46 }
 0x400   :  { %v714_v50 = vpop.permute.xlu1 %713  ;;  %v729_v63 = vpop.permute.xlu0 %728 }
 0x404   :  { %v633_v52 = vpop.permute.xlu1 %632 }
 0x405   :  { %v653_v30 = vsub.f32 %v3836_v43, %v633_v52 }
 0x408   :  { %v719_v56 = vpop.permute.xlu1 %718 }
 0x45c   :  { %v660_v61 = vpop.permute.xlu1 %659 }
 0x45d   :  { %v692_v62 = vmul.f32 %v660_v61, %v650_v59 }
 0x45f   :  { %v741_v42 = vadd.f32 %v709_v51, %v692_v62 }
 0x460   :  { %v665_v47 = vpop.permute.xlu1 %664 }
 0x461   :  { %v693_v0 = vmul.f32 %v665_v47, %v651_v13  ;;  %3125 = vmatmul.mubr.msk.f32.vlgmr.msra.gmra.mrb[16].mxu0 %vm244_vm5, %v741_v42 }
 0x462   :  { %3127 = vmatprep.mubr.msk.f32.mxu0 %vm3625_vm3, %v3626_v4 }
 0x463   :  { %v742_v3 = vadd.f32 %v714_v50, %v693_v0 }
 0x464   :  { %v670_v5 = vpop.permute.xlu0 %669 }
 0x465   :  { %v694_v60 = vmul.f32 %v670_v5, %v652_v54  ;;  %3128 = vmatmul.mubr.msk.f32.gmra.mrb[18].mxu0 %vm244_vm5, %v742_v3  ;;  %v638_v23 = vpop.permute.xlu1 %637 }
 0x466   :  { %3130 = vmatprep.mubr.msk.f32.mxu0 %vm3625_vm3, %v3626_v4  ;;  %v654_v11 = vsub.f32 %v3843_v49, %v638_v23 }
 0x467   :  { %v743_v6 = vadd.f32 %v719_v56, %v694_v60 }
 0x468   :  { %v675_v7 = vpop.permute.xlu0 %674 }
 0x469   :  { %v695_v9 = vmul.f32 %v675_v7, %v653_v30  ;;  %3131 = vmatmul.mubr.msk.f32.gmra.mrb[20].mxu0 %vm244_vm5, %v743_v6  ;;  %v643_v10 = vpop.permute.xlu1 %642 }
 0x46a   :  { %3133 = vmatprep.mubr.msk.f32.mxu0 %vm3625_vm3, %v3626_v4  ;;  %v655_v43 = vsub.f32 %v3850_v53, %v643_v10 }
 0x46b   :  { %v744_v37 = vadd.f32 %v724_v58, %v695_v9 }
 0x46d   :  { %3134 = vmatmul.mubr.msk.f32.gmra.mrb[22].mxu0 %vm244_vm5, %v744_v37  ;;  %v734_v17 = vpop.permute.xlu0 %733 }
 0x46e   :  { %v680_v12 = vpop.permute.xlu1 %679  ;;  %3136 = vmatprep.mubr.msk.f32.mxu0 %vm3625_vm3, %v3626_v4 }
 0x46f   :  { %v696_v14 = vmul.f32 %v680_v12, %v654_v11 }
 0x471   :  { %v745_v15 = vadd.f32 %v729_v63, %v696_v14 }
 0x472   :  { %v685_v16 = vpop.permute.xlu1 %684 }
 0x473   :  { %v697_v18 = vmul.f32 %v685_v16, %v655_v43  ;;  %3137 = vmatmul.mubr.msk.f32.gmra.mrb[24].mxu0 %vm244_vm5, %v745_v15 }
 0x474   :  { %3139 = vmatprep.mubr.msk.f32.mxu0 %vm3625_vm3, %v3626_v4  ;;  %v690_v21 = vpop.permute.xlu0 %689 }
 0x475   :  { %v746_v19 = vadd.f32 %v734_v17, %v697_v18 }
 0x477   :  { %3140 = vmatmul.mubr.msk.f32.gmra.mrb[26].mxu0 %vm244_vm5, %v746_v19  ;;  %v648_v49 = vpop.permute.xlu1 %647 }
 0x478   :  { %v656_v20 = vsub.f32 %v3857_v57, %v648_v49  ;;  %3142 = vmatprep.mubr.msk.f32.mxu0 %vm3625_vm3, %v3626_v4 }
 0x47a   :  { %v698_v53 = vmul.f32 %v690_v21, %v656_v20 }
 0x47b   :  { %v739_v24 = vpop.permute.xlu1 %738 }
 0x47c   :  { %v747_v25 = vadd.f32 %v739_v24, %v698_v53 }
 0x47e   :  { %3143 = vmatmul.mubr.msk.f32.gmra.mrb[28].mxu0 %vm244_vm5, %v747_v25 }
 0x47f   :  { %3203 = vmatprep.mubr.msk.f32.mxu0 %vm3625_vm3, %v3626_v4 }
 0x534   :  { %v846_v28 = vpop.f32.mrb[16].mxu0 }
 0x535   :  { %v847_v1 = vadd.f32 %v2849_v27, %v846_v28  ;;  %v3126_v31 = vpop.f32.mrb[17].mxu0 }
 0x537   :  { %v880_v57 = vmul.f32 0.2, %v847_v1 }
 0x538   :  { %v851_v41 = vpop.f32.mrb[18].mxu0 }
 0x539   :  { %v4112_v44 = vmax.f32 %v847_v1, %v880_v57  ;;  %v852_v8 = vadd.f32 %v2849_v27, %v851_v41  ;;  %v3129_v45 = vpop.f32.mrb[19].mxu0 }
 0x53a   :  { %v1193_v45 = vld [vmem:[%s4952_s10 + $0x8] sm:$0xff] }
 0x53b   :  { %v881_v46 = vmul.f32 0.2, %v852_v8  ;;  %v895_v48 = vsel %vm894_vm11, %v4112_v44, 0.0  ;;  %v916_v50 = vmul.f32 %v4112_v44, %v4112_v44 }
 0x53c   :  { %896 = vadd.xlane.f32.xlu1 %v895_v48  ;;  %v856_v51 = vpop.f32.mrb[20].mxu0  ;;  %v1195_v48 = vld [vmem:[%s4952_s10 + $0x18] sm:$0xff] }
 0x53d   :  { %v4118_v52 = vmax.f32 %v852_v8, %v881_v46  ;;  %v857_v55 = vadd.f32 %v2849_v27, %v856_v51  ;;  %v3132_v56 = vpop.f32.mrb[21].mxu0  ;;  %v923_v58 = vsel %vm894_vm11, %v916_v50, 0.0  ;;  %v1194_v46 = vld [vmem:[%s4952_s10 + $0x10] sm:$0xff]  ;;  %v1197_v50 = vld [vmem:[%s4952_s10 + $0x28] sm:$0xff] }
 0x53e   :  { %924 = vadd.xlane.f32.xlu0 %v923_v58  ;;  %v1320_v51 = vld [vmem:[%s4953_s11 + $0x10] sm:$0xff] }
 0x53f   :  { %v882_v59 = vmul.f32 0.2, %v857_v55  ;;  %v898_v63 = vsel %vm894_vm11, %v4118_v52, 0.0  ;;  %v917_v47 = vmul.f32 %v4118_v52, %v4118_v52 }
 0x540   :  { %v861_v61 = vpop.f32.mrb[22].mxu0 }
 0x541   :  { %v4121_v62 = vmax.f32 %v857_v55, %v882_v59  ;;  %v862_v13 = vadd.f32 %v2849_v27, %v861_v61  ;;  %v3135_v42 = vpop.f32.mrb[23].mxu0  ;;  %v926_v60 = vsel %vm894_vm11, %v917_v47, 0.0  ;;  %v1322_v55 = vld [vmem:[%s4953_s11 + $0x20] sm:$0xff] }
 0x542   :  { %899 = vadd.xlane.f32.xlu0 %v898_v63 }
 0x543   :  { %v883_v0 = vmul.f32 0.2, %v862_v13  ;;  %v901_v54 = vsel %vm894_vm11, %v4121_v62, 0.0  ;;  %v918_v3 = vmul.f32 %v4121_v62, %v4121_v62 }
 0x544   :  { %902 = vadd.xlane.f32.xlu1 %v901_v54 }
 0x545   :  { %v4131_v5 = vmax.f32 %v862_v13, %v883_v0  ;;  %v929_v7 = vsel %vm894_vm11, %v918_v3, 0.0 }
 0x546   :  { %927 = vadd.xlane.f32.xlu0 %v926_v60  ;;  %v866_v23 = vpop.f32.mrb[24].mxu0 }
 0x547   :  { %v867_v30 = vadd.f32 %v2849_v27, %v866_v23  ;;  %v3138_v6 = vpop.f32.mrb[25].mxu0  ;;  %v904_v10 = vsel %vm894_vm11, %v4131_v5, 0.0  ;;  %v919_v37 = vmul.f32 %v4131_v5, %v4131_v5 }
 0x548   :  { %930 = vadd.xlane.f32.xlu1 %v929_v7 }
 0x549   :  { %v884_v9 = vmul.f32 0.2, %v867_v30  ;;  %v932_v16 = vsel %vm894_vm11, %v919_v37, 0.0 }
 0x54a   :  { %905 = vadd.xlane.f32.xlu0 %v904_v10  ;;  %v871_v11 = vpop.f32.mrb[26].mxu0 }
 0x54b   :  { %v4139_v12 = vmax.f32 %v867_v30, %v884_v9  ;;  %v872_v14 = vadd.f32 %v2849_v27, %v871_v11  ;;  %v3141_v43 = vpop.f32.mrb[27].mxu0 }
 0x54d   :  { %v885_v15 = vmul.f32 0.2, %v872_v14  ;;  %v907_v17 = vsel %vm894_vm11, %v4139_v12, 0.0  ;;  %v920_v18 = vmul.f32 %v4139_v12, %v4139_v12 }
 0x54e   :  { %933 = vadd.xlane.f32.xlu0 %v932_v16  ;;  %908 = vadd.xlane.f32.xlu1 %v907_v17  ;;  %v1196_v17 = vld [vmem:[%s4952_s10 + $0x20] sm:$0xff] }
 0x54f   :  { %v4146_v19 = vmax.f32 %v872_v14, %v885_v15  ;;  %v935_v20 = vsel %vm894_vm11, %v920_v18, 0.0  ;;  %v1198_v18 = vld [vmem:[%s4952_s10 + $0x30] sm:$0xff] }
 0x551   :  { %v876_v49 = vpop.f32.mrb[28].mxu0  ;;  %v910_v21 = vsel %vm894_vm11, %v4146_v19, 0.0  ;;  %v921_v53 = vmul.f32 %v4146_v19, %v4146_v19 }
 0x552   :  { %v877_v24 = vadd.f32 %v2849_v27, %v876_v49  ;;  %936 = vadd.xlane.f32.xlu1 %v935_v20  ;;  %911 = vadd.xlane.f32.xlu0 %v910_v21  ;;  %v3144_v25 = vpop.f32.mrb[29].mxu0  ;;  %v1192_v27 = vld [vmem:[%s4952_s10] sm:$0xff]  ;;  %v1319_v49 = vld [vmem:[%s4953_s11 + $0x8] sm:$0xff]  ;;  %v1321_v20 = vld [vmem:[%s4953_s11 + $0x18] sm:$0xff] }
 0x553   :  { %v938_v1 = vsel %vm894_vm11, %v921_v53, 0.0  ;;  %v1323_v21 = vld [vmem:[%s4953_s11 + $0x28] sm:$0xff] }
 0x554   :  { %v886_v28 = vmul.f32 0.2, %v877_v24 }
 0x556   :  { %v4154_v31 = vmax.f32 %v877_v24, %v886_v28  ;;  %939 = vadd.xlane.f32.xlu0 %v938_v1  ;;  %v1524_v28 = vld [vmem:[%s4954_s12] sm:$0xf] }
 0x558   :  { %v913_v57 = vsel %vm894_vm11, %v4154_v31, 0.0  ;;  %v922_v41 = vmul.f32 %v4154_v31, %v4154_v31 }
 0x559   :  { %914 = vadd.xlane.f32.xlu1 %v913_v57 }
 0x55a   :  { %v941_v8 = vsel %vm894_vm11, %v922_v41, 0.0 }
 0x55b   :  { %942 = vadd.xlane.f32.xlu0 %v941_v8 }
 0x56a   :  { %1206 = vrot.lane.b32.xlu1 %v1192_v27, %s3628_s25 }
 0x56e   :  { %1208 = vrot.lane.b32.xlu1 %v1193_v45, %s3628_s25 }
 0x571   :  { %1214 = vrot.lane.b32.xlu0 %v1196_v17, %s3628_s25 }
 0x572   :  { %1210 = vrot.lane.b32.xlu1 %v1194_v46, %s3628_s25 }
 0x575   :  { %1218 = vrot.lane.b32.xlu0 %v1198_v18, %s3628_s25 }
 0x576   :  { %1212 = vrot.lane.b32.xlu1 %v1195_v48, %s3628_s25 }
 0x57a   :  { %1216 = vrot.lane.b32.xlu1 %v1197_v50, %s3628_s25 }
 0x57e   :  { %1337 = vperm.xlu1 %3477, %v1320_v51  }
 0x582   :  { %1347 = vperm.xlu1 %3477, %v1322_v55  }
 0x5c9   :  { %v897_v58 = vpop.xlane.xlu1 %896 }
 0x5cb   :  { %v925_v56 = vpop.xlane.xlu0 %924 }
 0x5cc   :  { %v944_v42 = vsel %vm294_vm7, %v897_v58, %v925_v56 }
 0x5cf   :  { %v900_v59 = vpop.xlane.xlu0 %899 }
 0x5d1   :  { %v903_v61 = vpop.xlane.xlu1 %902 }
 0x5d3   :  { %v928_v13 = vpop.xlane.xlu0 %927 }
 0x5d4   :  { %v945_v63 = vsel %vm294_vm7, %v900_v59, %v928_v13 }
 0x5d5   :  { %v3403_v47 = vpack.c.bf16 %v945_v63, %v944_v42  ;;  %v931_v0 = vpop.xlane.xlu1 %930 }
 0x5d6   :  { %v946_v23 = vsel %vm294_vm7, %v903_v61, %v931_v0 }
 0x5d7   :  { %v906_v54 = vpop.xlane.xlu0 %905  ;;  %3404 = vmatprep.subr.bf16.mxu1 %v3403_v47 }
 0x5d8   :  { %3406 = vmatpush3.bf16.msra.mxu1 %v3403_v47 }
 0x5db   :  { %v934_v3 = vpop.xlane.xlu0 %933  ;;  %v909_v60 = vpop.xlane.xlu1 %908 }
 0x5dc   :  { %v947_v30 = vsel %vm294_vm7, %v906_v54, %v934_v3 }
 0x5dd   :  { %v3407_v6 = vpack.c.bf16 %v947_v30, %v946_v23 }
 0x5df   :  { %v912_v7 = vpop.xlane.xlu0 %911  ;;  %3408 = vmatprep.subr.bf16.mxu1 %v3407_v6  ;;  %v937_v9 = vpop.xlane.xlu1 %936 }
 0x5e0   :  { %3410 = vmatpush3.bf16.msra.mxu1 %v3407_v6  ;;  %v948_v37 = vsel %vm294_vm7, %v909_v60, %v937_v9 }
 0x5e3   :  { %v940_v10 = vpop.xlane.xlu0 %939 }
 0x5e4   :  { %v949_v11 = vsel %vm294_vm7, %v912_v7, %v940_v10 }
 0x5e5   :  { %v3411_v14 = vpack.c.bf16 %v949_v11, %v948_v37 }
 0x5e6   :  { %v915_v43 = vpop.xlane.xlu1 %914 }
 0x5e7   :  { %3412 = vmatprep.subr.bf16.mxu1 %v3411_v14 }
 0x5e8   :  { %v943_v15 = vpop.xlane.xlu0 %942  ;;  %3414 = vmatpush3.bf16.msra.mxu1 %v3411_v14 }
 0x5e9   :  { %v950_v16 = vsel %vm294_vm7, %v915_v43, %v943_v15 }
 0x5ea   :  { %3157 = vmatprep.subr.mxu1 %v950_v16 }
 0x5ec   :  { %3158 = vmatpush3.msra.mxu1 %v950_v16 }
 0x5ed   :  { %3160 = vmatmul.mubr.msk.f32.vlgmr.msra.gmra.mrb[14].mxu1 %vm302_vm6, %v3882_v26  ;;  %3415 = vmatprep.subr.bf16.mxu1 %v3623_v2  ;;  %v1318_v26 = vld [vmem:[%s4953_s11] sm:$0xff] }
 0x5ee   :  { %3166 = vmatprep.mubr.msk.f32.mxu1 %vm3625_vm3, %v3626_v4  ;;  %1327 = vperm.xlu0 %3479, %v1318_v26  }
 0x5f2   :  { %1332 = vperm.xlu0 %3479, %v1319_v49   ;;  %v2875_v49 = vld [vmem:[%s4955_s13] ss:$0 sm:$0xff] }
 0x5f6   :  { %1342 = vperm.xlu0 %3479, %v1321_v20  }
 0x5fa   :  { %1352 = vperm.xlu0 %3479, %v1323_v21  }
 0x6c0   :  { %v3161_v53 = vpop.f32.mrb[14].mxu1 }
 0x6c1   :  { %v1017_v24 = vpop.f32.mrb[15].mxu1 }
 0x6c2   :  { %v3416_v25 = vpack.c.bf16 %v3161_v53, %v1017_v24 }
 0x6c4   :  { %3418 = vmatpush3.bf16.msk.msra.mxu1 %vm3890_vm9, %v3416_v25 }
 0x6c5   :  { %3224 = vmatprep.subr.mxu1 %v3626_v4 }
 0x6c7   :  { %3167 = vmatmul.mubr.msk.f32.vlgmr.msra.gmra.mrb[16].mxu1 %vm384_vm10, %v3899_v32  ;;  %v1517_v32 = vld [vmem:[%s4990_s7] sm:$0xff] }
 0x6c8   :  { %3169 = vmatprep.mubr.msk.f32.mxu1 %vm3625_vm3, %v3626_v4  ;;  %3225 = vmatpush3.msk.msra.mxu1 %vm133_vm0, %v1524_v28 }
 0x6c9   :  { %3289 = vmatprep.subr.mxu1 %v3626_v4 }
 0x6cb   :  { %3170 = vmatmul.mubr.msk.f32.gmra.mrb[18].mxu1 %vm384_vm10, %v3908_v33  ;;  %v1518_v33 = vld [vmem:[%s4990_s7 + $0x8] sm:$0xff] }
 0x6cc   :  { %3172 = vmatprep.mubr.msk.f32.mxu1 %vm3625_vm3, %v3626_v4 }
 0x6cf   :  { %3173 = vmatmul.mubr.msk.f32.gmra.mrb[20].mxu1 %vm384_vm10, %v3917_v34  ;;  %v1519_v34 = vld [vmem:[%s4990_s7 + $0x10] sm:$0xff] }
 0x6d0   :  { %3175 = vmatprep.mubr.msk.f32.mxu1 %vm3625_vm3, %v3626_v4 }
 0x6d3   :  { %3176 = vmatmul.mubr.msk.f32.gmra.mrb[22].mxu1 %vm384_vm10, %v3926_v35  ;;  %v1520_v35 = vld [vmem:[%s4990_s7 + $0x18] sm:$0xff] }
 0x6d4   :  { %3178 = vmatprep.mubr.msk.f32.mxu1 %vm3625_vm3, %v3626_v4 }
 0x6d7   :  { %3179 = vmatmul.mubr.msk.f32.gmra.mrb[24].mxu1 %vm384_vm10, %v3935_v36  ;;  %v1521_v36 = vld [vmem:[%s4990_s7 + $0x20] sm:$0xff] }
 0x6d8   :  { %3181 = vmatprep.mubr.msk.f32.mxu1 %vm3625_vm3, %v3626_v4 }
 0x6db   :  { %3182 = vmatmul.mubr.msk.f32.gmra.mrb[26].mxu1 %vm384_vm10, %v3944_v38  ;;  %v1522_v38 = vld [vmem:[%s4990_s7 + $0x28] sm:$0xff] }
 0x6dc   :  { %3184 = vmatprep.mubr.msk.f32.mxu1 %vm3625_vm3, %v3626_v4 }
 0x6df   :  { %3185 = vmatmul.mubr.msk.f32.gmra.mrb[28].mxu1 %vm384_vm10, %v3953_v39  ;;  %v1523_v39 = vld [vmem:[%s4990_s7 + $0x30] sm:$0xff] }
 0x6e0   :  { %3226 = vmatprep.mubr.msk.f32.mxu1 %vm3625_vm3, %v3626_v4 }
 0x6e3   :  { %3227 = vmatmul.mubr.msk.f32.vlgmr.msra.gmra.mrb[30].mxu1 %vm1532_vm12, %v1517_v32 }
 0x6e4   :  { %3229 = vmatprep.mubr.msk.f32.mxu1 %vm3625_vm3, %v3626_v4 }
 0x6e7   :  { %3230 = vmatmul.mubr.msk.f32.gmra.mrb[32].mxu1 %vm1532_vm12, %v1518_v33 }
 0x6e8   :  { %3232 = vmatprep.mubr.msk.f32.mxu1 %vm3625_vm3, %v3626_v4 }
 0x6eb   :  { %3233 = vmatmul.mubr.msk.f32.gmra.mrb[34].mxu1 %vm1532_vm12, %v1519_v34 }
 0x6ec   :  { %3235 = vmatprep.mubr.msk.f32.mxu1 %vm3625_vm3, %v3626_v4 }
 0x6ef   :  { %3236 = vmatmul.mubr.msk.f32.gmra.mrb[36].mxu1 %vm1532_vm12, %v1520_v35 }
 0x6f0   :  { %3238 = vmatprep.mubr.msk.f32.mxu1 %vm3625_vm3, %v3626_v4 }
 0x6f3   :  { %3239 = vmatmul.mubr.msk.f32.gmra.mrb[38].mxu1 %vm1532_vm12, %v1521_v36 }
 0x6f4   :  { %3241 = vmatprep.mubr.msk.f32.mxu1 %vm3625_vm3, %v3626_v4 }
 0x6f7   :  { %3242 = vmatmul.mubr.msk.f32.gmra.mrb[40].mxu1 %vm1532_vm12, %v1522_v38 }
 0x6f8   :  { %3244 = vmatprep.mubr.msk.f32.mxu1 %vm3625_vm3, %v3626_v4 }
 0x6fb   :  { %3245 = vmatmul.mubr.msk.f32.gmra.mrb[42].mxu1 %vm1532_vm12, %v1523_v39 }
 0x6fc   :  { %3291 = vmatprep.mubr.msk.f32.mxu1 %vm3625_vm3, %v3626_v4 }
 0x79a   :  { %v1095_v1 = vpop.f32.mrb[16].mxu1 }
 0x79b   :  { %v4297_v57 = vmul.f32 0.00390625, %v1095_v1  ;;  %v3168_v41 = vpop.f32.mrb[17].mxu1 }
 0x79d   :  { %1236 = vperm.xlu1 %3477, %v4297_v57   ;;  %v1136_v45 = vmul.f32 %v4297_v57, %v4297_v57 }
 0x79e   :  { %v1100_v8 = vpop.f32.mrb[18].mxu1 }
 0x79f   :  { %v4300_v27 = vmul.f32 0.00390625, %v1100_v8  ;;  %v3171_v46 = vpop.f32.mrb[19].mxu1 }
 0x7a1   :  { %1150 = vrot.lane.b32.xlu1 %v1136_v45, %s3628_s25  ;;  %v1137_v48 = vmul.f32 %v4300_v27, %v4300_v27 }
 0x7a2   :  { %v1105_v50 = vpop.f32.mrb[20].mxu1 }
 0x7a3   :  { %1152 = vrot.lane.b32.xlu0 %v1137_v48, %s3628_s25  ;;  %v3174_v51 = vpop.f32.mrb[21].mxu1  ;;  %v4308_v55 = vmul.f32 0.00390625, %v1105_v50 }
 0x7a5   :  { %1241 = vperm.xlu1 %3477, %v4300_v27   ;;  %v1138_v61 = vmul.f32 %v4308_v55, %v4308_v55 }
 0x7a6   :  { %v1110_v56 = vpop.f32.mrb[22].mxu1 }
 0x7a7   :  { %v4311_v58 = vmul.f32 0.00390625, %v1110_v56  ;;  %v3177_v59 = vpop.f32.mrb[23].mxu1 }
 0x7a9   :  { %1246 = vperm.xlu1 %3477, %v4308_v55   ;;  %1251 = vperm.xlu0 %3479, %v4311_v58   ;;  %v1139_v0 = vmul.f32 %v4311_v58, %v4311_v58 }
 0x7aa   :  { %v1115_v13 = vpop.f32.mrb[24].mxu1 }
 0x7ab   :  { %v4317_v42 = vmul.f32 0.00390625, %v1115_v13  ;;  %v3180_v63 = vpop.f32.mrb[25].mxu1 }
 0x7ad   :  { %1154 = vrot.lane.b32.xlu1 %v1138_v61, %s3628_s25  ;;  %v1140_v47 = vmul.f32 %v4317_v42, %v4317_v42 }
 0x7ae   :  { %v1120_v54 = vpop.f32.mrb[26].mxu1 }
 0x7af   :  { %1158 = vrot.lane.b32.xlu0 %v1140_v47, %s3628_s25  ;;  %v4325_v3 = vmul.f32 0.00390625, %v1120_v54  ;;  %v3183_v60 = vpop.f32.mrb[27].mxu1 }
 0x7b1   :  { %1156 = vrot.lane.b32.xlu1 %v1139_v0, %s3628_s25  ;;  %v1141_v6 = vmul.f32 %v4325_v3, %v4325_v3 }
 0x7b2   :  { %v1125_v23 = vpop.f32.mrb[28].mxu1 }
 0x7b3   :  { %1261 = vperm.xlu0 %3479, %v4325_v3   ;;  %v4329_v30 = vmul.f32 0.00390625, %v1125_v23  ;;  %v3186_v7 = vpop.f32.mrb[29].mxu1 }
 0x7b5   :  { %1256 = vperm.xlu1 %3477, %v4317_v42   ;;  %v1142_v10 = vmul.f32 %v4329_v30, %v4329_v30 }
 0x7b6   :  { %v1623_v9 = vpop.f32.mrb[30].mxu1 }
 0x7b7   :  { %1160 = vrot.lane.b32.xlu0 %v1141_v6, %s3628_s25  ;;  %v3228_v37 = vpop.f32.mrb[31].mxu1  ;;  %v1624_v21 = vadd.f32 %v2875_v49, %v1623_v9 }
 0x7b8   :  { %3480 = vset.pattern.permute.xlu0 %v3629_v22 }
 0x7b9   :  { %3481 = vset.pattern.permute.xlu1 %v3629_v22  ;;  %v1657_v28 = vmul.f32 0.2, %v1624_v21 }
 0x7ba   :  { %v1628_v11 = vpop.f32.mrb[32].mxu1 }
 0x7bb   :  { %1162 = vrot.lane.b32.xlu0 %v1142_v10, %s3628_s25  ;;  %v3231_v14 = vpop.f32.mrb[33].mxu1  ;;  %v1629_v24 = vadd.f32 %v2875_v49, %v1628_v11  ;;  %v4343_v38 = vmax.f32 %v1624_v21, %v1657_v28  ;;  %v1370_v21 = vld [vmem:[%s4991_s9 + $0x18] sm:$0xff]  ;;  %v1372_v28 = vld [vmem:[%s4991_s9 + $0x28] sm:$0xff] }
 0x7bd   :  { %v1658_v33 = vmul.f32 0.2, %v1629_v24  ;;  %v1672_v46 = vsel %vm1671_vm13, %v4343_v38, 0.0  ;;  %v1693_v48 = vmul.f32 %v4343_v38, %v4343_v38 }
 0x7be   :  { %v1633_v43 = vpop.f32.mrb[34].mxu1 }
 0x7bf   :  { %v3234_v15 = vpop.f32.mrb[35].mxu1  ;;  %v1634_v34 = vadd.f32 %v2875_v49, %v1633_v43  ;;  %v4345_v39 = vmax.f32 %v1629_v24, %v1658_v33  ;;  %v1700_v13 = vsel %vm1671_vm13, %v1693_v48, 0.0  ;;  %v4407_v33 = vpop.permute.xlu0 %1214 }
 0x7c1   :  { %v1659_v1 = vmul.f32 0.2, %v1634_v34  ;;  %v1675_v41 = vsel %vm1671_vm13, %v4345_v39, 0.0  ;;  %v1694_v63 = vmul.f32 %v4345_v39, %v4345_v39 }
 0x7c2   :  { %v1638_v16 = vpop.f32.mrb[36].mxu1 }
 0x7c3   :  { %v3237_v17 = vpop.f32.mrb[37].mxu1  ;;  %v4353_v50 = vmax.f32 %v1634_v34, %v1659_v1  ;;  %v1639_v47 = vadd.f32 %v2875_v49, %v1638_v16  ;;  %v1703_v23 = vsel %vm1671_vm13, %v1694_v63, 0.0  ;;  %v1367_v16 = vld [vmem:[%s4991_s9] sm:$0xff]  ;;  %v1207_v1 = vpop.permute.xlu1 %1206 }
 0x7c4   :  { %v1368_v17 = vld [vmem:[%s4991_s9 + $0x8] sm:$0xff] }
 0x7c5   :  { %v1678_v59 = vsel %vm1671_vm13, %v4353_v50, 0.0  ;;  %v1660_v6 = vmul.f32 0.2, %v1639_v47  ;;  %v1695_v7 = vmul.f32 %v4353_v50, %v4353_v50 }
 0x7c6   :  { %v1643_v18 = vpop.f32.mrb[38].mxu1 }
 0x7c7   :  { %v3240_v26 = vpop.f32.mrb[39].mxu1  ;;  %v1644_v35 = vadd.f32 %v2875_v49, %v1643_v18  ;;  %v4374_v37 = vmax.f32 %v1639_v47, %v1660_v6  ;;  %v1706_v11 = vsel %vm1671_vm13, %v1695_v7, 0.0  ;;  %v3420_v18 = vpack.c.bf16 %v1368_v17, %v1367_v16 }
 0x7c9   :  { %v1661_v8 = vmul.f32 0.2, %v1644_v35  ;;  %v1681_v43 = vsel %vm1671_vm13, %v4374_v37, 0.0  ;;  %v1696_v15 = vmul.f32 %v4374_v37, %v4374_v37  ;;  %3421 = vmatpush3.bf16.msra.mxu0 %v3420_v18 }
 0x7ca   :  { %v1648_v20 = vpop.f32.mrb[40].mxu1  ;;  %3422 = vmatprep.subr.bf16.mxu0 %v3623_v2 }
 0x7cb   :  { %v3243_v53 = vpop.f32.mrb[41].mxu1  ;;  %v1649_v36 = vadd.f32 %v2875_v49, %v1648_v20  ;;  %v4355_v51 = vmax.f32 %v1644_v35, %v1661_v8  ;;  %v1709_v26 = vsel %vm1671_vm13, %v1696_v15, 0.0  ;;  %v1369_v20 = vld [vmem:[%s4991_s9 + $0x10] sm:$0xff]  ;;  %v4418_v8 = vpop.permute.xlu0 %1218 }
 0x7cc   :  { %v3423_v53 = vpack.c.bf16 %v1370_v21, %v1369_v20  ;;  %v1373_v35 = vld [vmem:[%s4991_s9 + $0x30] sm:$0xff] }
 0x7cd   :  { %v1662_v45 = vmul.f32 0.2, %v1649_v36  ;;  %v1684_v0 = vsel %vm1671_vm13, %v4355_v51, 0.0 }
 0x7ce   :  { %v1653_v25 = vpop.f32.mrb[42].mxu1  ;;  %3424 = vmatpush3.bf16.msra.mxu0 %v3423_v53 }
 0x7cf   :  { %v3246_v32 = vpop.f32.mrb[43].mxu1  ;;  %v4357_v56 = vmax.f32 %v1649_v36, %v1662_v45  ;;  %v1654_v61 = vadd.f32 %v2875_v49, %v1653_v25  ;;  %v1697_v49 = vmul.f32 %v4355_v51, %v4355_v51  ;;  %v1371_v25 = vld [vmem:[%s4991_s9 + $0x20] sm:$0xff]  ;;  %3425 = vmatprep.subr.bf16.mxu0 %v3623_v2  ;;  %v1374_v36 = vld [vmem:[%s4991_s9 + $0x38] sm:$0xff]  ;;  %v1209_v45 = vpop.permute.xlu1 %1208 }
 0x7d0   :  { %v3426_v32 = vpack.c.bf16 %v1372_v28, %v1371_v25 }
 0x7d1   :  { %v1663_v54 = vmul.f32 0.2, %v1654_v61  ;;  %v1698_v60 = vmul.f32 %v4357_v56, %v4357_v56  ;;  %v1712_v24 = vsel %vm1671_vm13, %v1697_v49, 0.0  ;;  %v1687_v34 = vsel %vm1671_vm13, %v4357_v56, 0.0 }
 0x7d2   :  { %3427 = vmatpush3.bf16.msra.mxu0 %v3426_v32 }
 0x7d3   :  { %v4371_v9 = vmax.f32 %v1654_v61, %v1663_v54  ;;  %v1715_v10 = vsel %vm1671_vm13, %v1698_v60, 0.0  ;;  %3428 = vmatprep.subr.bf16.mxu0 %v3623_v2  ;;  %v1211_v48 = vpop.permute.xlu1 %1210 }
 0x7d5   :  { %v1690_v14 = vsel %vm1671_vm13, %v4371_v9, 0.0 }
 0x7d7   :  { %v1213_v61 = vpop.permute.xlu1 %1212 }
 0x7d9   :  { %1676 = vadd.xlane.f32.xlu1 %v1675_v41  ;;  %v3429_v41 = vpack.c.bf16 %v1374_v36, %v1373_v35 }
 0x7da   :  { %1673 = vadd.xlane.f32.xlu0 %v1672_v46  ;;  %v4420_v46 = vpop.permute.xlu0 %1327 }
 0x7db   :  { %3430 = vmatpush3.bf16.msra.mxu0 %v3429_v41  ;;  %v1217_v63 = vpop.permute.xlu1 %1216 }
 0x7dd   :  { %1679 = vadd.xlane.f32.xlu1 %v1678_v59 }
 0x7de   :  { %1701 = vadd.xlane.f32.xlu0 %v1700_v13  ;;  %v4422_v59 = vpop.permute.xlu0 %1332 }
 0x7e1   :  { %1685 = vadd.xlane.f32.xlu1 %v1684_v0  ;;  %v4428_v0 = vpop.permute.xlu1 %1337 }
 0x7e2   :  { %1704 = vadd.xlane.f32.xlu0 %v1703_v23  ;;  %v4424_v13 = vpop.permute.xlu0 %1342 }
 0x7e5   :  { %1716 = vadd.xlane.f32.xlu1 %v1715_v10  ;;  %v4431_v23 = vpop.permute.xlu1 %1347 }
 0x7e6   :  { %1707 = vadd.xlane.f32.xlu0 %v1706_v11  ;;  %v4426_v47 = vpop.permute.xlu0 %1352 }
 0x7e9   :  { %1691 = vadd.xlane.f32.xlu1 %v1690_v14 }
 0x7ea   :  { %1682 = vadd.xlane.f32.xlu0 %v1681_v43 }
 0x7ee   :  { %1710 = vadd.xlane.f32.xlu0 %v1709_v26 }
 0x7f2   :  { %1713 = vadd.xlane.f32.xlu0 %v1712_v24 }
 0x7f6   :  { %1688 = vadd.xlane.f32.xlu0 %v1687_v34 }
 0x815   :  { %v1153_v54 = vpop.permute.xlu0 %1152 }
 0x816   :  { %v1172_v60 = vsub.f32 %v4300_v27, %v1153_v54 }
 0x818   :  { %v1179_v6 = vadd.f32 1e-05, %v1172_v60 }
 0x81a   :  { %3520 = vrsqrt.f32 %v1179_v6 }
 0x81c   :  { %v4433_v7 = vpop.permute.xlu1 %1236 }
 0x820   :  { %v1151_v10 = vpop.permute.xlu1 %1150 }
 0x821   :  { %v1171_v11 = vsub.f32 %v4297_v57, %v1151_v10  ;;  %v1699_v10 = vmul.f32 %v4371_v9, %v4371_v9 }
 0x823   :  { %v1178_v14 = vadd.f32 1e-05, %v1171_v11 }
 0x824   :  { %v3521_v43 = vpop.eup %3520  ;;  %v4436_v15 = vpop.permute.xlu1 %1241 }
 0x825   :  { %3522 = vrsqrt.f32 %v1178_v14  ;;  %v1228_v16 = vmul.f32 %v3521_v43, %v1209_v45 }
 0x827   :  { %1283 = vperm.xlu1 %3481, %v1228_v16  }
 0x828   :  { %v4438_v17 = vpop.permute.xlu1 %1246  ;;  %v4440_v18 = vpop.permute.xlu0 %1251 }
 0x82c   :  { %v1155_v27 = vpop.permute.xlu1 %1154  ;;  %v1159_v26 = vpop.permute.xlu0 %1158 }
 0x82d   :  { %v1173_v49 = vsub.f32 %v4308_v55, %v1155_v27  ;;  %v1175_v53 = vsub.f32 %v4317_v42, %v1159_v26 }
 0x82f   :  { %v3523_v20 = vpop.eup %3522  ;;  %v1180_v21 = vadd.f32 1e-05, %v1173_v49  ;;  %v1182_v32 = vadd.f32 1e-05, %v1175_v53 }
 0x830   :  { %v1157_v57 = vpop.permute.xlu1 %1156  ;;  %v1227_v24 = vmul.f32 %v3523_v20, %v1207_v1 }
 0x831   :  { %3524 = vrsqrt.f32 %v1180_v21  ;;  %v1174_v25 = vsub.f32 %v4311_v58, %v1157_v57 }
 0x832   :  { %v4445_v28 = vpop.permute.xlu0 %1261  ;;  %1278 = vperm.xlu0 %3480, %v1227_v24  }
 0x833   :  { %v1181_v34 = vadd.f32 1e-05, %v1174_v25 }
 0x834   :  { %v1257_v16 = vpop.permute.xlu1 %1256 }
 0x835   :  { %3526 = vrsqrt.f32 %v1181_v34 }
 0x836   :  { %v1161_v35 = vpop.permute.xlu0 %1160  ;;  %3528 = vrsqrt.f32 %v1182_v32 }
 0x837   :  { %v1176_v36 = vsub.f32 %v4325_v3, %v1161_v35 }
 0x839   :  { %v1183_v55 = vadd.f32 1e-05, %v1176_v36 }
 0x83a   :  { %v1163_v11 = vpop.permute.xlu0 %1162 }
 0x83b   :  { %v3525_v41 = vpop.eup %3524  ;;  %3530 = vrsqrt.f32 %v1183_v55  ;;  %v1177_v3 = vsub.f32 %v4329_v30, %v1163_v11  ;;  %v1269_v55 = vsub.f32 %v4112_v44, %v4433_v7 }
 0x83c   :  { %v1229_v45 = vmul.f32 %v3525_v41, %v1211_v48  ;;  %v1718_v48 = vsel %vm1671_vm13, %v1699_v10, 0.0 }
 0x83e   :  { %1288 = vperm.xlu1 %3481, %v1229_v45  }
 0x83f   :  { %v3527_v42 = vpop.eup %3526 }
 0x840   :  { %v1230_v1 = vmul.f32 %v3527_v42, %v1213_v61  ;;  %v3529_v54 = vpop.eup %3528  ;;  %v1184_v61 = vadd.f32 1e-05, %v1177_v3  ;;  %v1270_v42 = vsub.f32 %v4118_v52, %v4436_v15 }
 0x841   :  { %v1231_v58 = vmul.f32 %v3529_v54, %v4407_v33  ;;  %v1324_v33 = vld [vmem:[%s4953_s11 + $0x30] sm:$0xff] }
 0x842   :  { %1293 = vperm.xlu1 %3481, %v1230_v1   ;;  %3532 = vrsqrt.f32 %v1184_v61 }
 0x845   :  { %v3531_v60 = vpop.eup %3530 }
 0x846   :  { %1298 = vperm.xlu1 %3481, %v1231_v58   ;;  %v1232_v6 = vmul.f32 %v3531_v60, %v1217_v63 }
 0x84a   :  { %1303 = vperm.xlu1 %3481, %v1232_v6  }
 0x84c   :  { %v3533_v63 = vpop.eup %3532 }
 0x84d   :  { %v1233_v14 = vmul.f32 %v3533_v63, %v4418_v8  ;;  %v1273_v63 = vsub.f32 %v4139_v12, %v1257_v16 }
 0x84e   :  { %3482 = vset.pattern.permute.xlu1 %v3627_v40 }
 0x84f   :  { %1266 = vperm.xlu1 %3482, %v4329_v30  }
 0x851   :  { %1719 = vadd.xlane.f32.xlu0 %v1718_v48  ;;  %v1272_v48 = vsub.f32 %v4131_v5, %v4440_v18  ;;  %v1274_v5 = vsub.f32 %v4146_v19, %v4445_v28 }
 0x853   :  { %1357 = vperm.xlu1 %3482, %v1324_v33  }
 0x866   :  { %v1677_v30 = vpop.xlane.xlu1 %1676 }
 0x867   :  { %1308 = vperm.xlu0 %3480, %v1233_v14   ;;  %v1674_v43 = vpop.xlane.xlu0 %1673 }
 0x86a   :  { %v1680_v57 = vpop.xlane.xlu1 %1679 }
 0x86b   :  { %v1702_v27 = vpop.xlane.xlu0 %1701  ;;  %3483 = vset.pattern.permute.xlu0 %v3627_v40 }
 0x86c   :  { %v1721_v26 = vsel %vm294_vm7, %v1674_v43, %v1702_v27 }
 0x86e   :  { %v1686_v25 = vpop.xlane.xlu1 %1685 }
 0x86f   :  { %v1705_v49 = vpop.xlane.xlu0 %1704 }
 0x870   :  { %v1722_v20 = vsel %vm294_vm7, %v1677_v30, %v1705_v49  ;;  %v3591_v49 = vld [vmem:[%s4963_s21 + $0x8] sm:$0x1f] }
 0x871   :  { %v3431_v21 = vpack.c.bf16 %v1722_v20, %v1721_v26  ;;  %v1971_v20 = vld [vmem:[%s4960_s18 + $0x10] sm:$0xff] }
 0x872   :  { %v1717_v8 = vpop.xlane.xlu1 %1716 }
 0x873   :  { %3432 = vmatprep.subr.bf16.mxu0 %v3431_v21  ;;  %v1708_v53 = vpop.xlane.xlu0 %1707 }
 0x874   :  { %v1723_v54 = vsel %vm294_vm7, %v1680_v57, %v1708_v53  ;;  %v1974_v53 = vld [vmem:[%s4960_s18 + $0x28] sm:$0xff] }
 0x876   :  { %v1692_v35 = vpop.xlane.xlu1 %1691 }
 0x877   :  { %v1683_v24 = vpop.xlane.xlu0 %1682 }
 0x87b   :  { %v1711_v32 = vpop.xlane.xlu0 %1710 }
 0x87c   :  { %v1724_v58 = vsel %vm294_vm7, %v1683_v24, %v1711_v32 }
 0x87d   :  { %v3435_v10 = vpack.c.bf16 %v1724_v58, %v1723_v54 }
 0x87f   :  { %v1714_v34 = vpop.xlane.xlu0 %1713 }
 0x880   :  { %v1725_v11 = vsel %vm294_vm7, %v1686_v25, %v1714_v34 }
 0x883   :  { %v1689_v36 = vpop.xlane.xlu0 %1688 }
 0x884   :  { %v1726_v44 = vsel %vm294_vm7, %v1689_v36, %v1717_v8 }
 0x885   :  { %v3439_v7 = vpack.c.bf16 %v1726_v44, %v1725_v11  ;;  %v3593_v11 = vld [vmem:[%s4962_s20 + $0x8] sm:$0xff]  ;;  %v3595_v44 = vld [vmem:[%s4962_s20 + $0x18] sm:$0xff] }
 0x8a6   :  { %v1284_v41 = vpop.permute.xlu1 %1283 }
 0x8a7   :  { %v1312_v60 = vmul.f32 %v1284_v41, %v1270_v42 }
 0x8a9   :  { %v1361_v52 = vadd.f32 %v4422_v59, %v1312_v60 }
 0x8b1   :  { %v1279_v45 = vpop.permute.xlu0 %1278 }
 0x8b2   :  { %v1311_v1 = vmul.f32 %v1279_v45, %v1269_v55 }
 0x8b4   :  { %v1360_v6 = vadd.f32 %v4420_v46, %v1311_v1  ;;  %v1271_v46 = vsub.f32 %v4121_v62, %v4438_v17 }
 0x8b6   :  { %3204 = vmatmul.mubr.msk.f32.vlgmr.msra.gmra.mrb[30].mxu0 %vm894_vm11, %v1360_v6 }
 0x8b7   :  { %3434 = vmatpush3.bf16.msra.mxu0 %v3431_v21  ;;  %3206 = vmatprep.mubr.msk.f32.mxu0 %vm3625_vm3, %v3626_v4  ;;  %v1972_v21 = vld [vmem:[%s4960_s18 + $0x18] sm:$0xff] }
 0x8b8   :  { %3436 = vmatprep.subr.bf16.mxu0 %v3435_v10 }
 0x8ba   :  { %3207 = vmatmul.mubr.msk.f32.gmra.mrb[32].mxu0 %vm894_vm11, %v1361_v52  ;;  %v3596_v52 = vld [vmem:[%s4962_s20 + $0x20] sm:$0xff] }
 0x8bb   :  { %3438 = vmatpush3.bf16.msra.mxu0 %v3435_v10  ;;  %3209 = vmatprep.mubr.msk.f32.mxu0 %vm3625_vm3, %v3626_v4  ;;  %v3592_v10 = vld [vmem:[%s4962_s20] sm:$0xff] }
 0x8bc   :  { %3440 = vmatprep.subr.bf16.mxu0 %v3439_v7 }
 0x8bd   :  { %v1289_v15 = vpop.permute.xlu1 %1288 }
 0x8be   :  { %v1313_v3 = vmul.f32 %v1289_v15, %v1271_v46  ;;  %v3598_v46 = vld [vmem:[%s4962_s20 + $0x30] sm:$0xff]  ;;  %v1969_v15 = vld [vmem:[%s4960_s18] sm:$0xff] }
 0x8bf   :  { %3442 = vmatpush3.bf16.msra.mxu0 %v3439_v7  ;;  %v3597_v7 = vld [vmem:[%s4962_s20 + $0x28] sm:$0xff]  ;;  %1983 = vrot.lane.b32.xlu1 %v1969_v15, %s3628_s25 }
 0x8c0   :  { %v1362_v59 = vadd.f32 %v4428_v0, %v1313_v3 }
 0x8c1   :  { %v1294_v33 = vpop.permute.xlu1 %1293 }
 0x8c2   :  { %v1314_v61 = vmul.f32 %v1294_v33, %v1272_v48  ;;  %3210 = vmatmul.mubr.msk.f32.gmra.mrb[34].mxu0 %vm894_vm11, %v1362_v59 }
 0x8c3   :  { %3212 = vmatprep.mubr.msk.f32.mxu0 %vm3625_vm3, %v3626_v4 }
 0x8c4   :  { %v1363_v62 = vadd.f32 %v4424_v13, %v1314_v61 }
 0x8c5   :  { %v1299_v17 = vpop.permute.xlu1 %1298 }
 0x8c6   :  { %v1315_v14 = vmul.f32 %v1299_v17, %v1273_v63  ;;  %3213 = vmatmul.mubr.msk.f32.gmra.mrb[36].mxu0 %vm894_vm11, %v1363_v62  ;;  %v2095_v63 = vld [vmem:[%s4961_s19] sm:$0xff] }
 0x8c7   :  { %3215 = vmatprep.mubr.msk.f32.mxu0 %vm3625_vm3, %v3626_v4 }
 0x8c8   :  { %v1364_v0 = vadd.f32 %v4431_v23, %v1315_v14 }
 0x8c9   :  { %v1304_v18 = vpop.permute.xlu1 %1303 }
 0x8ca   :  { %v1316_v43 = vmul.f32 %v1304_v18, %v1274_v5  ;;  %3216 = vmatmul.mubr.msk.f32.gmra.mrb[38].mxu0 %vm894_vm11, %v1364_v0 }
 0x8cb   :  { %3218 = vmatprep.mubr.msk.f32.mxu0 %vm3625_vm3, %v3626_v4 }
 0x8cc   :  { %v1365_v12 = vadd.f32 %v4426_v47, %v1316_v43  ;;  %v3590_v47 = vld [vmem:[%s4963_s21] sm:$0xff]  ;;  %s4992_s21 = sld [smem:[#allocation12_spill]] }
 0x8ce   :  { %3219 = vmatmul.mubr.msk.f32.gmra.mrb[40].mxu0 %vm894_vm11, %v1365_v12  ;;  %v1267_v19 = vpop.permute.xlu1 %1266 }
 0x8cf   :  { %3221 = vmatprep.mubr.msk.f32.mxu0 %vm3625_vm3, %v3626_v4  ;;  %v1275_v23 = vsub.f32 %v4154_v31, %v1267_v19  ;;  %v1970_v31 = vld [vmem:[%s4960_s18 + $0x8] sm:$0xff] }
 0x8d0   :  { %1985 = vrot.lane.b32.xlu0 %v1970_v31, %s3628_s25 }
 0x8d2   :  { %v1358_v30 = vpop.permute.xlu1 %1357 }
 0x8d4   :  { %1987 = vrot.lane.b32.xlu0 %v1971_v20, %s3628_s25 }
 0x8d8   :  { %1989 = vrot.lane.b32.xlu0 %v1972_v21, %s3628_s25 }
 0x8dc   :  { %1993 = vrot.lane.b32.xlu0 %v1974_v53, %s3628_s25 }
 0x8de   :  { %v1720_v13 = vpop.xlane.xlu0 %1719 }
 0x8df   :  { %v1727_v16 = vsel %vm294_vm7, %v1692_v35, %v1720_v13  ;;  %v2098_v13 = vld [vmem:[%s4961_s19 + $0x18] sm:$0xff] }
 0x8e0   :  { %3259 = vmatprep.subr.mxu0 %v1727_v16 }
 0x8e1   :  { %3260 = vmatpush3.msra.mxu0 %v1727_v16 }
 0x8e2   :  { %3443 = vmatprep.subr.bf16.mxu0 %v3623_v2 }
 0x8e6   :  { %v1309_v28 = vpop.permute.xlu0 %1308 }
 0x8e7   :  { %v1317_v27 = vmul.f32 %v1309_v28, %v1275_v23 }
 0x8e9   :  { %v1366_v26 = vadd.f32 %v1358_v30, %v1317_v27  ;;  %v2099_v27 = vld [vmem:[%s4961_s19 + $0x20] sm:$0xff] }
 0x8eb   :  { %3222 = vmatmul.mubr.msk.f32.gmra.mrb[42].mxu0 %vm894_vm11, %v1366_v26 }
 0x8ec   :  { %3261 = vmatprep.mubr.msk.f32.mxu0 %vm302_vm6, %v3590_v47 }
 0x8ef   :  { %3262 = vmatmul.mubr.msk.f32.vlgmr.msra.gmra.mrb[44].mxu0 %vm302_vm6, %v3591_v49 }
 0x8f0   :  { %3268 = vmatprep.mubr.msk.f32.mxu0 %vm3625_vm3, %v3626_v4 }
 0x989   :  { %v4531_v57 = vpop.f32.mrb[30].mxu0 }
 0x98a   :  { %v3205_v24 = vpop.f32.mrb[31].mxu0 }
 0x98d   :  { %v4533_v25 = vpop.f32.mrb[32].mxu0 }
 0x98e   :  { %v3208_v32 = vpop.f32.mrb[33].mxu0 }
 0x995   :  { %v4535_v8 = vpop.f32.mrb[34].mxu0 }
 0x996   :  { %v3211_v34 = vpop.f32.mrb[35].mxu0 }
 0x999   :  { %v4537_v35 = vpop.f32.mrb[36].mxu0 }
 0x99a   :  { %v3214_v36 = vpop.f32.mrb[37].mxu0 }
 0x99b   :  { %v1973_v36 = vld [vmem:[%s4960_s18 + $0x20] sm:$0xff] }
 0x99d   :  { %v4539_v55 = vpop.f32.mrb[38].mxu0 }
 0x99e   :  { %v3217_v41 = vpop.f32.mrb[39].mxu0 }
 0x99f   :  { %v1975_v41 = vld [vmem:[%s4960_s18 + $0x30] sm:$0xff] }
 0x9a1   :  { %v4541_v45 = vpop.f32.mrb[40].mxu0 }
 0x9a2   :  { %v3220_v42 = vpop.f32.mrb[41].mxu0 }
 0x9a3   :  { %v2096_v42 = vld [vmem:[%s4961_s19 + $0x8] sm:$0xff] }
 0x9be   :  { %v4543_v1 = vpop.f32.mrb[42].mxu0 }
 0x9bf   :  { %v3223_v54 = vpop.f32.mrb[43].mxu0 }
 0x9c0   :  { %v2097_v54 = vld [vmem:[%s4961_s19 + $0x10] sm:$0xff] }
 0x9c2   :  { %v3263_v58 = vpop.f32.mrb[44].mxu0 }
 0x9c3   :  { %v1794_v60 = vpop.f32.mrb[45].mxu0 }
 0x9c4   :  { %v3444_v6 = vpack.c.bf16 %v3263_v58, %v1794_v60  ;;  %v2144_v58 = vld [vmem:[%s4956_s14] sm:$0xff]  ;;  %v1984_v60 = vpop.permute.xlu1 %1983 }
 0x9c5   :  { %3290 = vmatpush3.msra.mxu1 %v2144_v58  ;;  %v2287_v58 = vld [vmem:[%s4958_s16] sm:$0xff] }
 0x9c6   :  { %3446 = vmatpush3.bf16.msk.msra.mxu0 %vm3890_vm9, %v3444_v6  ;;  %3450 = vmatprep.subr.bf16.mxu1 %v3623_v2 }
 0x9c7   :  { %3447 = vmatprep.subr.bf16.mxu0 %v3623_v2 }
 0x9c9   :  { %3269 = vmatmul.mubr.msk.f32.vlgmr.msra.gmra.mrb[46].mxu0 %vm384_vm10, %v3592_v10 }
 0x9ca   :  { %3271 = vmatprep.mubr.msk.f32.mxu0 %vm3625_vm3, %v3626_v4 }
 0x9cd   :  { %3272 = vmatmul.mubr.msk.f32.gmra.mrb[48].mxu0 %vm384_vm10, %v3593_v11 }
 0x9ce   :  { %3274 = vmatprep.mubr.msk.f32.mxu0 %vm3625_vm3, %v3626_v4 }
 0x9d1   :  { %3275 = vmatmul.mubr.msk.f32.gmra.mrb[50].mxu0 %vm384_vm10, %v3594_v29 }
 0x9d2   :  { %3277 = vmatprep.mubr.msk.f32.mxu0 %vm3625_vm3, %v3626_v4 }
 0x9d5   :  { %3278 = vmatmul.mubr.msk.f32.gmra.mrb[52].mxu0 %vm384_vm10, %v3595_v44 }
 0x9d6   :  { %3280 = vmatprep.mubr.msk.f32.mxu0 %vm3625_vm3, %v3626_v4 }
 0x9d9   :  { %3281 = vmatmul.mubr.msk.f32.gmra.mrb[54].mxu0 %vm384_vm10, %v3596_v52 }
 0x9da   :  { %3283 = vmatprep.mubr.msk.f32.mxu0 %vm3625_vm3, %v3626_v4 }
 0x9dd   :  { %3284 = vmatmul.mubr.msk.f32.gmra.mrb[56].mxu0 %vm384_vm10, %v3597_v7 }
 0x9de   :  { %3286 = vmatprep.mubr.msk.f32.mxu0 %vm3625_vm3, %v3626_v4 }
 0x9e1   :  { %3287 = vmatmul.mubr.msk.f32.gmra.mrb[58].mxu0 %vm384_vm10, %v3598_v46 }
 0x9e2   :  { %3316 = vmatprep.mubr.msk.f32.mxu0 %vm3625_vm3, %v3626_v4 }
 0xa9c   :  { %v1872_v3 = vpop.f32.mrb[46].mxu0 }
 0xa9d   :  { %v1906_v48 = vmul.f32 0.03125, %v1872_v3  ;;  %v3270_v59 = vpop.f32.mrb[47].mxu0 }
 0xa9f   :  { %v1913_v33 = vmul.f32 %v1906_v48, %v1906_v48  ;;  %2013 = vperm.xlu0 %3483, %v1906_v48  }
 0xaa0   :  { %v1877_v61 = vpop.f32.mrb[48].mxu0 }
 0xaa1   :  { %v1907_v62 = vmul.f32 0.03125, %v1877_v61  ;;  %1927 = vrot.lane.b32.xlu1 %v1913_v33, %s3628_s25  ;;  %v3273_v17 = vpop.f32.mrb[49].mxu0  ;;  %v1986_v61 = vpop.permute.xlu0 %1985 }
 0xaa3   :  { %v1914_v14 = vmul.f32 %v1907_v62, %v1907_v62  ;;  %2104 = vperm.xlu0 %3483, %v2095_v63  }
 0xaa4   :  { %v1882_v5 = vpop.f32.mrb[50].mxu0 }
 0xaa5   :  { %v1908_v0 = vmul.f32 0.03125, %v1882_v5  ;;  %1929 = vrot.lane.b32.xlu1 %v1914_v14, %s3628_s25  ;;  %v3276_v18 = vpop.f32.mrb[51].mxu0 }
 0xaa7   :  { %v1915_v43 = vmul.f32 %v1908_v0, %v1908_v0  ;;  %2023 = vperm.xlu0 %3483, %v1908_v0  }
 0xaa8   :  { %v1887_v12 = vpop.f32.mrb[52].mxu0 }
 0xaa9   :  { %v1909_v16 = vmul.f32 0.03125, %v1887_v12  ;;  %1931 = vrot.lane.b32.xlu1 %v1915_v43, %s3628_s25  ;;  %v3279_v19 = vpop.f32.mrb[53].mxu0  ;;  %v1988_v12 = vpop.permute.xlu0 %1987 }
 0xaab   :  { %v1916_v23 = vmul.f32 %v1909_v16, %v1909_v16  ;;  %2119 = vperm.xlu0 %3483, %v2098_v13  }
 0xaac   :  { %v1892_v28 = vpop.f32.mrb[54].mxu0 }
 0xaad   :  { %v4606_v30 = vmul.f32 0.03125, %v1892_v28  ;;  %1933 = vrot.lane.b32.xlu1 %v1916_v23, %s3628_s25  ;;  %v3282_v26 = vpop.f32.mrb[55].mxu0 }
 0xaae   :  { %v1990_v26 = vpop.permute.xlu0 %1989 }
 0xaaf   :  { %v1917_v47 = vmul.f32 %v4606_v30, %v4606_v30  ;;  %2124 = vperm.xlu0 %3483, %v2099_v27  }
 0xab0   :  { %v1897_v49 = vpop.f32.mrb[56].mxu0 }
 0xab1   :  { %v4611_v31 = vmul.f32 0.03125, %v1897_v49  ;;  %1935 = vrot.lane.b32.xlu1 %v1917_v47, %s3628_s25  ;;  %v3285_v20 = vpop.f32.mrb[57].mxu0 }
 0xab3   :  { %v1918_v21 = vmul.f32 %v4611_v31, %v4611_v31  ;;  %3486 = vset.pattern.permute.xlu0 %v3629_v22 }
 0xab4   :  { %v1902_v53 = vpop.f32.mrb[58].mxu0 }
 0xab5   :  { %v4617_v24 = vmul.f32 0.03125, %v1902_v53  ;;  %1937 = vrot.lane.b32.xlu1 %v1918_v21, %s3628_s25  ;;  %v3288_v32 = vpop.f32.mrb[59].mxu0  ;;  %v2100_v53 = vld [vmem:[%s4961_s19 + $0x28] sm:$0xff] }
 0xab7   :  { %v1919_v34 = vmul.f32 %v4617_v24, %v4617_v24 }
 0xab9   :  { %1939 = vrot.lane.b32.xlu1 %v1919_v34, %s3628_s25 }
 0xabd   :  { %1991 = vrot.lane.b32.xlu1 %v1973_v36, %s3628_s25 }
 0xac1   :  { %1995 = vrot.lane.b32.xlu1 %v1975_v41, %s3628_s25 }
 0xac5   :  { %2018 = vperm.xlu1 %3482, %v1907_v62  }
 0xac9   :  { %2109 = vperm.xlu1 %3482, %v2096_v42  }
 0xacd   :  { %2028 = vperm.xlu1 %3482, %v1909_v16  }
 0xad1   :  { %2114 = vperm.xlu1 %3482, %v2097_v54   ;;  %v2101_v54 = vld [vmem:[%s4961_s19 + $0x30] sm:$0xff] }
 0xad5   :  { %3484 = vset.pattern.permute.xlu1 %v3629_v22 }
 0xb13   :  { %v1928_v6 = vpop.permute.xlu1 %1927 }
 0xb14   :  { %v1948_v10 = vsub.f32 %v1906_v48, %v1928_v6 }
 0xb16   :  { %v1955_v11 = vadd.f32 1e-05, %v1948_v10 }
 0xb17   :  { %v1930_v29 = vpop.permute.xlu1 %1929 }
 0xb18   :  { %3534 = vrsqrt.f32 %v1955_v11  ;;  %v1949_v44 = vsub.f32 %v1907_v62, %v1930_v29 }
 0xb1a   :  { %v1956_v52 = vadd.f32 1e-05, %v1949_v44 }
 0xb1b   :  { %v1932_v7 = vpop.permute.xlu1 %1931 }
 0xb1c   :  { %3536 = vrsqrt.f32 %v1956_v52  ;;  %v1950_v46 = vsub.f32 %v1908_v0, %v1932_v7 }
 0xb1e   :  { %v1957_v15 = vadd.f32 1e-05, %v1950_v46 }
 0xb1f   :  { %v1934_v3 = vpop.permute.xlu1 %1933 }
 0xb20   :  { %3538 = vrsqrt.f32 %v1957_v15  ;;  %v1951_v59 = vsub.f32 %v1909_v16, %v1934_v3 }
 0xb22   :  { %v3535_v33 = vpop.eup %3534  ;;  %v1958_v63 = vadd.f32 1e-05, %v1951_v59 }
 0xb23   :  { %v1936_v17 = vpop.permute.xlu1 %1935  ;;  %v2004_v14 = vmul.f32 %v3535_v33, %v1984_v60 }
 0xb24   :  { %3540 = vrsqrt.f32 %v1958_v63  ;;  %v1952_v48 = vsub.f32 %v4606_v30, %v1936_v17 }
 0xb25   :  { %2055 = vperm.xlu1 %3484, %v2004_v14  }
 0xb26   :  { %v3537_v5 = vpop.eup %3536  ;;  %v1959_v18 = vadd.f32 1e-05, %v1952_v48 }
 0xb27   :  { %v1938_v62 = vpop.permute.xlu1 %1937  ;;  %v2005_v43 = vmul.f32 %v3537_v5, %v1986_v61 }
 0xb28   :  { %3542 = vrsqrt.f32 %v1959_v18  ;;  %v1953_v0 = vsub.f32 %v4611_v31, %v1938_v62 }
 0xb29   :  { %2060 = vperm.xlu1 %3484, %v2005_v43  }
 0xb2a   :  { %v3539_v13 = vpop.eup %3538  ;;  %v1960_v16 = vadd.f32 1e-05, %v1953_v0 }
 0xb2b   :  { %v1940_v19 = vpop.permute.xlu1 %1939  ;;  %v2006_v23 = vmul.f32 %v3539_v13, %v1988_v12 }
 0xb2c   :  { %3544 = vrsqrt.f32 %v1960_v16  ;;  %v1954_v28 = vsub.f32 %v4617_v24, %v1940_v19 }
 0xb2d   :  { %3485 = vset.pattern.permute.xlu1 %v3627_v40  ;;  %2065 = vperm.xlu0 %3486, %v2006_v23  }
 0xb2e   :  { %v3541_v27 = vpop.eup %3540  ;;  %v1961_v47 = vadd.f32 1e-05, %v1954_v28  ;;  %2033 = vperm.xlu1 %3485, %v4606_v30   ;;  %v1994_v30 = vpop.permute.xlu0 %1993 }
 0xb2f   :  { %v2007_v49 = vmul.f32 %v3541_v27, %v1990_v26  ;;  %v1992_v21 = vpop.permute.xlu1 %1991 }
 0xb30   :  { %3546 = vrsqrt.f32 %v1961_v47 }
 0xb31   :  { %2070 = vperm.xlu0 %3486, %v2007_v49  }
 0xb32   :  { %v3543_v20 = vpop.eup %3542  ;;  %2038 = vperm.xlu1 %3485, %v4611_v31   ;;  %v2014_v10 = vpop.permute.xlu0 %2013 }
 0xb33   :  { %v2008_v32 = vmul.f32 %v3543_v20, %v1992_v21  ;;  %v1996_v36 = vpop.permute.xlu1 %1995 }
 0xb35   :  { %3487 = vset.pattern.permute.xlu0 %v3627_v40 }
 0xb36   :  { %v3545_v34 = vpop.eup %3544  ;;  %3488 = vset.pattern.permute.xlu1 %v3629_v22  ;;  %2129 = vperm.xlu0 %3487, %v2100_v53   ;;  %v2105_v11 = vpop.permute.xlu0 %2104  ;;  %v2894_v53 = vld [vmem:[%s4957_s15] ss:$0 sm:$0xff] }
 0xb37   :  { %2075 = vperm.xlu1 %3488, %v2008_v32   ;;  %v2009_v41 = vmul.f32 %v3545_v34, %v1994_v30 }
 0xb3a   :  { %v3547_v42 = vpop.eup %3546  ;;  %3490 = vset.pattern.permute.xlu0 %v3629_v22  ;;  %v2288_v22 = vld [vmem:[%s4958_s16 + $0x8] sm:$0xff]  ;;  %v2024_v44 = vpop.permute.xlu0 %2023 }
 0xb3b   :  { %v2010_v31 = vmul.f32 %v3547_v42, %v1996_v36  ;;  %2080 = vperm.xlu1 %3488, %v2009_v41   ;;  %v3448_v60 = vpack.c.bf16 %v2288_v22, %v2287_v58  ;;  %v2048_v17 = vsub.f32 %v4353_v50, %v2024_v44 }
 0xb3d   :  { %2085 = vperm.xlu0 %3490, %v2010_v31   ;;  %3449 = vmatpush3.bf16.msra.mxu0 %v3448_v60 }
 0xb3e   :  { %v2120_v7 = vpop.permute.xlu0 %2119 }
 0xb3f   :  { %3489 = vset.pattern.permute.xlu1 %v3627_v40 }
 0xb40   :  { %2043 = vperm.xlu1 %3489, %v4617_v24  }
 0xb41   :  { %3491 = vset.pattern.permute.xlu0 %v3627_v40  ;;  %v2046_v40 = vsub.f32 %v4343_v38, %v2014_v10 }
 0xb42   :  { %v2125_v33 = vpop.permute.xlu0 %2124 }
 0xb44   :  { %2134 = vperm.xlu1 %3489, %v2101_v54   ;;  %v2019_v6 = vpop.permute.xlu1 %2018 }
 0xb45   :  { %v2047_v3 = vsub.f32 %v4345_v39, %v2019_v6 }
 0xb48   :  { %v2110_v24 = vpop.permute.xlu1 %2109 }
 0xb4c   :  { %v2029_v29 = vpop.permute.xlu1 %2028 }
 0xb4d   :  { %v2049_v39 = vsub.f32 %v4374_v37, %v2029_v29 }
 0xb50   :  { %v2115_v52 = vpop.permute.xlu1 %2114 }
 0xba4   :  { %v2056_v46 = vpop.permute.xlu1 %2055 }
 0xba5   :  { %v2088_v15 = vmul.f32 %v2056_v46, %v2046_v40 }
 0xba7   :  { %v2137_v59 = vadd.f32 %v2105_v11, %v2088_v15 }
 0xba8   :  { %v2061_v61 = vpop.permute.xlu1 %2060 }
 0xba9   :  { %v2089_v63 = vmul.f32 %v2061_v61, %v2047_v3  ;;  %3292 = vmatmul.mubr.msk.f32.vlgmr.msra.gmra.mrb[44].mxu1 %vm1671_vm13, %v2137_v59 }
 0xbaa   :  { %3294 = vmatprep.mubr.msk.f32.mxu1 %vm3625_vm3, %v3626_v4 }
 0xbab   :  { %v2138_v14 = vadd.f32 %v2110_v24, %v2089_v63 }
 0xbac   :  { %v2066_v48 = vpop.permute.xlu0 %2065 }
 0xbad   :  { %v2090_v5 = vmul.f32 %v2066_v48, %v2048_v17  ;;  %3295 = vmatmul.mubr.msk.f32.gmra.mrb[46].mxu1 %vm1671_vm13, %v2138_v14  ;;  %v2034_v38 = vpop.permute.xlu1 %2033 }
 0xbae   :  { %3297 = vmatprep.mubr.msk.f32.mxu1 %vm3625_vm3, %v3626_v4  ;;  %v2050_v0 = vsub.f32 %v4355_v51, %v2034_v38 }
 0xbaf   :  { %v2139_v18 = vadd.f32 %v2115_v52, %v2090_v5 }
 0xbb0   :  { %v2071_v62 = vpop.permute.xlu0 %2070 }
 0xbb1   :  { %v2091_v43 = vmul.f32 %v2071_v62, %v2049_v39  ;;  %3298 = vmatmul.mubr.msk.f32.gmra.mrb[48].mxu1 %vm1671_vm13, %v2139_v18  ;;  %v2039_v12 = vpop.permute.xlu1 %2038  ;;  %v2902_v62 = vld [vmem:[%s4959_s17] ss:$0 sm:$0xff] }
 0xbb2   :  { %3300 = vmatprep.mubr.msk.f32.mxu1 %vm3625_vm3, %v3626_v4  ;;  %v2051_v37 = vsub.f32 %v4357_v56, %v2039_v12 }
 0xbb3   :  { %v2140_v50 = vadd.f32 %v2120_v7, %v2091_v43 }
 0xbb5   :  { %3301 = vmatmul.mubr.msk.f32.gmra.mrb[50].mxu1 %vm1671_vm13, %v2140_v50  ;;  %v2130_v28 = vpop.permute.xlu0 %2129 }
 0xbb6   :  { %v2076_v13 = vpop.permute.xlu1 %2075  ;;  %3303 = vmatprep.mubr.msk.f32.mxu1 %vm3625_vm3, %v3626_v4 }
 0xbb7   :  { %v2092_v16 = vmul.f32 %v2076_v13, %v2050_v0 }
 0xbb9   :  { %v2141_v19 = vadd.f32 %v2125_v33, %v2092_v16 }
 0xbba   :  { %v2081_v23 = vpop.permute.xlu1 %2080 }
 0xbbb   :  { %v2093_v27 = vmul.f32 %v2081_v23, %v2051_v37  ;;  %3304 = vmatmul.mubr.msk.f32.gmra.mrb[52].mxu1 %vm1671_vm13, %v2141_v19 }
 0xbbc   :  { %3306 = vmatprep.mubr.msk.f32.mxu1 %vm3625_vm3, %v3626_v4  ;;  %v2086_v49 = vpop.permute.xlu0 %2085 }
 0xbbd   :  { %v2142_v26 = vadd.f32 %v2130_v28, %v2093_v27 }
 0xbbf   :  { %3307 = vmatmul.mubr.msk.f32.gmra.mrb[54].mxu1 %vm1671_vm13, %v2142_v26  ;;  %v2044_v51 = vpop.permute.xlu1 %2043 }
 0xbc0   :  { %v2052_v47 = vsub.f32 %v4371_v9, %v2044_v51  ;;  %3309 = vmatprep.mubr.msk.f32.mxu1 %vm3625_vm3, %v3626_v4 }
 0xbc2   :  { %v2094_v56 = vmul.f32 %v2086_v49, %v2052_v47 }
 0xbc3   :  { %v2135_v20 = vpop.permute.xlu1 %2134 }
 0xbc4   :  { %v2143_v21 = vadd.f32 %v2135_v20, %v2094_v56 }
 0xbc6   :  { %3310 = vmatmul.mubr.msk.f32.gmra.mrb[56].mxu1 %vm1671_vm13, %v2143_v21 }
 0xbc7   :  { %3351 = vmatprep.mubr.msk.f32.mxu1 %vm3625_vm3, %v3626_v4 }
 0xc7c   :  { %v2239_v32 = vpop.f32.mrb[44].mxu1 }
 0xc7d   :  { %v2240_v34 = vadd.f32 %v2894_v53, %v2239_v32  ;;  %v3293_v30 = vpop.f32.mrb[45].mxu1 }
 0xc7f   :  { %v2273_v9 = vmul.f32 0.2, %v2240_v34 }
 0xc80   :  { %v2244_v36 = vpop.f32.mrb[46].mxu1 }
 0xc81   :  { %v2280_v41 = vmax.f32 %v2240_v34, %v2273_v9  ;;  %v2245_v42 = vadd.f32 %v2894_v53, %v2244_v36  ;;  %v3296_v31 = vpop.f32.mrb[47].mxu1 }
 0xc83   :  { %v2274_v54 = vmul.f32 0.2, %v2245_v42  ;;  %3317 = vmatmul.mubr.msk.f32.vlgmr.msra.gmra.mrb[60].mxu0 %vm2296_vm14, %v2280_v41 }
 0xc84   :  { %v2249_v58 = vpop.f32.mrb[48].mxu1  ;;  %3319 = vmatprep.mubr.msk.f32.mxu0 %vm3625_vm3, %v3626_v4 }
 0xc85   :  { %v2281_v22 = vmax.f32 %v2245_v42, %v2274_v54  ;;  %v2250_v60 = vadd.f32 %v2894_v53, %v2249_v58  ;;  %v3299_v6 = vpop.f32.mrb[49].mxu1 }
 0xc87   :  { %v2275_v10 = vmul.f32 0.2, %v2250_v60  ;;  %3320 = vmatmul.mubr.msk.f32.gmra.mrb[62].mxu0 %vm2296_vm14, %v2281_v22 }
 0xc88   :  { %v2254_v24 = vpop.f32.mrb[50].mxu1  ;;  %3322 = vmatprep.mubr.msk.f32.mxu0 %vm3625_vm3, %v3626_v4 }
 0xc89   :  { %v2282_v11 = vmax.f32 %v2250_v60, %v2275_v10  ;;  %v2255_v29 = vadd.f32 %v2894_v53, %v2254_v24  ;;  %v3302_v44 = vpop.f32.mrb[51].mxu1 }
 0xc8b   :  { %v2276_v52 = vmul.f32 0.2, %v2255_v29  ;;  %3323 = vmatmul.mubr.msk.f32.gmra.mrb[64].mxu0 %vm2296_vm14, %v2282_v11 }
 0xc8c   :  { %3325 = vmatprep.mubr.msk.f32.mxu0 %vm3625_vm3, %v3626_v4 }
 0xc8d   :  { %v2283_v7 = vmax.f32 %v2255_v29, %v2276_v52  ;;  %v2867_v29 = vld [vmem:[%s4992_s21] ss:$0 sm:$0xff] }
 0xc8e   :  { %v2259_v40 = vpop.f32.mrb[52].mxu1  ;;  %v1470_v44 = vadd.f32 %v2867_v29, %v4531_v57  ;;  %v1475_v52 = vadd.f32 %v2867_v29, %v4533_v25 }
 0xc8f   :  { %v2260_v46 = vadd.f32 %v2894_v53, %v2259_v40  ;;  %v3305_v15 = vpop.f32.mrb[53].mxu1  ;;  %3326 = vmatmul.mubr.msk.f32.gmra.mrb[66].mxu0 %vm2296_vm14, %v2283_v7 }
 0xc90   :  { %3328 = vmatprep.mubr.msk.f32.mxu0 %vm3625_vm3, %v3626_v4  ;;  %v1503_v7 = vmul.f32 0.2, %v1470_v44  ;;  %v1504_v40 = vmul.f32 0.2, %v1475_v52 }
 0xc91   :  { %v2277_v3 = vmul.f32 0.2, %v2260_v46 }
 0xc92   :  { %v2264_v59 = vpop.f32.mrb[54].mxu1  ;;  %v1510_v15 = vmax.f32 %v1470_v44, %v1503_v7 }
 0xc93   :  { %v2284_v33 = vmax.f32 %v2260_v46, %v2277_v3  ;;  %v2265_v61 = vadd.f32 %v2894_v53, %v2264_v59  ;;  %v3308_v63 = vpop.f32.mrb[55].mxu1  ;;  %v1480_v3 = vadd.f32 %v2867_v29, %v4535_v8  ;;  %v1511_v59 = vmax.f32 %v1475_v52, %v1504_v40 }
 0xc95   :  { %v2278_v17 = vmul.f32 0.2, %v2265_v61  ;;  %3329 = vmatmul.mubr.msk.f32.gmra.mrb[68].mxu0 %vm2296_vm14, %v2284_v33  ;;  %v1485_v33 = vadd.f32 %v2867_v29, %v4537_v35 }
 0xc96   :  { %3331 = vmatprep.mubr.msk.f32.mxu0 %vm3625_vm3, %v3626_v4 }
 0xc97   :  { %v2285_v14 = vmax.f32 %v2265_v61, %v2278_v17  ;;  %v1505_v17 = vmul.f32 0.2, %v1480_v3 }
 0xc99   :  { %v2269_v48 = vpop.f32.mrb[56].mxu1  ;;  %3332 = vmatmul.mubr.msk.f32.gmra.mrb[70].mxu0 %vm2296_vm14, %v2285_v14 }
 0xc9a   :  { %v2270_v5 = vadd.f32 %v2894_v53, %v2269_v48  ;;  %v3311_v38 = vpop.f32.mrb[57].mxu1  ;;  %3334 = vmatprep.mubr.msk.f32.mxu0 %vm3625_vm3, %v3626_v4  ;;  %v1506_v48 = vmul.f32 0.2, %v1485_v33 }
 0xc9b   :  { %v1512_v38 = vmax.f32 %v1480_v3, %v1505_v17 }
 0xc9c   :  { %v2279_v39 = vmul.f32 0.2, %v2270_v5  ;;  %v1513_v35 = vmax.f32 %v1485_v33, %v1506_v48 }
 0xc9e   :  { %v2286_v18 = vmax.f32 %v2270_v5, %v2279_v39  ;;  %v1490_v39 = vadd.f32 %v2867_v29, %v4539_v55 }
 0xca0   :  { %3335 = vmatmul.mubr.msk.f32.gmra.mrb[72].mxu0 %vm2296_vm14, %v2286_v18 }
 0xd56   :  { %v2384_v43 = vpop.f32.mrb[60].mxu0 }
 0xd57   :  { %v2385_v12 = vadd.f32 %v2902_v62, %v2384_v43  ;;  %v3318_v50 = vpop.f32.mrb[61].mxu0  ;;  %v1495_v43 = vadd.f32 %v2867_v29, %v4541_v45 }
 0xd59   :  { %v2418_v0 = vmul.f32 0.2, %v2385_v12  ;;  %v1508_v55 = vmul.f32 0.2, %v1495_v43 }
 0xd5a   :  { %v2389_v13 = vpop.f32.mrb[62].mxu0 }
 0xd5b   :  { %v2425_v16 = vmax.f32 %v2385_v12, %v2418_v0  ;;  %v2390_v37 = vadd.f32 %v2902_v62, %v2389_v13  ;;  %v3321_v19 = vpop.f32.mrb[63].mxu0  ;;  %v1507_v13 = vmul.f32 0.2, %v1490_v39  ;;  %v1515_v45 = vmax.f32 %v1495_v43, %v1508_v55 }
 0xd5d   :  { %v2419_v23 = vmul.f32 0.2, %v2390_v37  ;;  %2439 = vrot.lane.b32.xlu1 %v2425_v16, %s3630_s5  ;;  %v1514_v19 = vmax.f32 %v1490_v39, %v1507_v13 }
 0xd5e   :  { %v2394_v28 = vpop.f32.mrb[64].mxu0 }
 0xd5f   :  { %v2426_v27 = vmax.f32 %v2390_v37, %v2419_v23  ;;  %v2395_v26 = vadd.f32 %v2902_v62, %v2394_v28  ;;  %v3324_v51 = vpop.f32.mrb[65].mxu0  ;;  %v1500_v23 = vadd.f32 %v2867_v29, %v4543_v1 }
 0xd61   :  { %v2420_v47 = vmul.f32 0.2, %v2395_v26  ;;  %2441 = vrot.lane.b32.xlu0 %v2426_v27, %s3630_s5  ;;  %v1509_v51 = vmul.f32 0.2, %v1500_v23 }
 0xd62   :  { %v2399_v49 = vpop.f32.mrb[66].mxu0 }
 0xd63   :  { %v2427_v56 = vmax.f32 %v2395_v26, %v2420_v47  ;;  %v2400_v20 = vadd.f32 %v2902_v62, %v2399_v49  ;;  %v3327_v21 = vpop.f32.mrb[67].mxu0 }
 0xd65   :  { %v2421_v53 = vmul.f32 0.2, %v2400_v20  ;;  %2443 = vrot.lane.b32.xlu1 %v2427_v56, %s3630_s5 }
 0xd67   :  { %v2428_v32 = vmax.f32 %v2400_v20, %v2421_v53  ;;  %v1516_v20 = vmax.f32 %v1500_v23, %v1509_v51  ;;  %v94_v53 = vld [vmem:[%s4965_s23] sm:$0xf] }
 0xd68   :  { %v2404_v34 = vpop.f32.mrb[68].mxu0 }
 0xd69   :  { %v2405_v30 = vadd.f32 %v2902_v62, %v2404_v34  ;;  %2445 = vrot.lane.b32.xlu0 %v2428_v32, %s3630_s5  ;;  %v3330_v9 = vpop.f32.mrb[69].mxu0  ;;  %v87_v32 = vld [vmem:[%s4964_s22] sm:$0xff] }
 0xd6a   :  { %v88_v9 = vld [vmem:[%s4964_s22 + $0x8] sm:$0xff] }
 0xd6b   :  { %v2422_v36 = vmul.f32 0.2, %v2405_v30 }
 0xd6c   :  { %v2409_v41 = vpop.f32.mrb[70].mxu0 }
 0xd6d   :  { %v2429_v42 = vmax.f32 %v2405_v30, %v2422_v36  ;;  %v2410_v31 = vadd.f32 %v2902_v62, %v2409_v41  ;;  %v3333_v54 = vpop.f32.mrb[71].mxu0  ;;  %v89_v36 = vld [vmem:[%s4964_s22 + $0x10] sm:$0xff]  ;;  %v90_v41 = vld [vmem:[%s4964_s22 + $0x18] sm:$0xff] }
 0xd6e   :  { %v93_v54 = vld [vmem:[%s4964_s22 + $0x30] sm:$0xff] }
 0xd6f   :  { %v2423_v58 = vmul.f32 0.2, %v2410_v31  ;;  %2447 = vrot.lane.b32.xlu1 %v2429_v42, %s3630_s5  ;;  %v91_v42 = vld [vmem:[%s4964_s22 + $0x20] sm:$0xff] }
 0xd71   :  { %v2430_v22 = vmax.f32 %v2410_v31, %v2423_v58  ;;  %v92_v31 = vld [vmem:[%s4964_s22 + $0x28] sm:$0xff]  ;;  %s3631_s22 = smov [#allocation2]  }
 0xd72   :  { %s2819_s7 = sshll.u32 %s3631_s22, 4  ;;  %s2820_s7 = int_to_ptr.vmem [resolvable:$true] %s2819_s7 }
 0xd73   :  { %2449 = vrot.lane.b32.xlu0 %v2430_v22, %s3630_s5  ;;  %v2414_v60 = vpop.f32.mrb[72].mxu0  ;;  %s3599_s0 = scalar_lea.vmem %s2820_s7, 896  ;;  %p3604_p1 = scmp.lt.s32.totalorder %s2820_s7, %s2820_s7 }
 0xd74   :  { %v2415_v6 = vadd.f32 %v2902_v62, %v2414_v60  ;;  %v3336_v10 = vpop.f32.mrb[73].mxu0  ;;  %p3600_p0 = scmp.ne.s32.totalorder %s2820_s7, %s3599_s0  ;;  %p3605_p2 = scmp.lt.s32.totalorder %s3599_s0, %s3599_s0 }
 0xd76   :  { %v2424_v24 = vmul.f32 0.2, %v2415_v6  ;;  %p3606_p3 = por %p3605_p2, %p3604_p1 }
 0xd78   :  { %v2431_v11 = vmax.f32 %v2415_v6, %v2424_v24  ;;  %p3607_p4 = pnand %p3606_p3, %p3600_p0 }
 0xd7a   :  { %2451 = vrot.lane.b32.xlu1 %v2431_v11, %s3630_s5  ;;  %v2692_v11 = vlaneseq }
 0xdcf   :  { %v2440_v46 = vpop.permute.xlu1 %2439 }
 0xdd0   :  { %v4734_v61 = vsel %vm244_vm5, %v1510_v15, %v2440_v46 }
 0xdd1   :  { %v2467_v57 = vmul.f32 %v4734_v61, %v4734_v61 }
 0xdd3   :  { %v2442_v63 = vpop.permute.xlu0 %2441 }
 0xdd4   :  { %v4737_v14 = vsel %vm244_vm5, %v1511_v59, %v2442_v63 }
 0xdd5   :  { %v2468_v25 = vmul.f32 %v4737_v14, %v4737_v14 }
 0xdd7   :  { %v3451_v5 = vpack.c.bf16 %v2468_v25, %v2467_v57  ;;  %v2444_v8 = vpop.permute.xlu1 %2443 }
 0xdd8   :  { %v4745_v18 = vsel %vm244_vm5, %v1512_v38, %v2444_v8 }
 0xdd9   :  { %3452 = vmatpush3.bf16.msra.mxu1 %v3451_v5  ;;  %v2469_v50 = vmul.f32 %v4745_v18, %v4745_v18 }
 0xdda   :  { %3453 = vmatprep.subr.bf16.mxu1 %v3623_v2 }
 0xddb   :  { %v2446_v62 = vpop.permute.xlu0 %2445 }
 0xddc   :  { %v4750_v12 = vsel %vm244_vm5, %v1513_v35, %v2446_v62 }
 0xddd   :  { %v2470_v0 = vmul.f32 %v4750_v12, %v4750_v12 }
 0xddf   :  { %v3454_v16 = vpack.c.bf16 %v2470_v0, %v2469_v50 }
 0xde1   :  { %3455 = vmatpush3.bf16.msra.mxu1 %v3454_v16  ;;  %v2448_v37 = vpop.permute.xlu1 %2447 }
 0xde2   :  { %3456 = vmatprep.subr.bf16.mxu1 %v3623_v2  ;;  %v4759_v28 = vsel %vm244_vm5, %v1514_v19, %v2448_v37 }
 0xde3   :  { %v2471_v47 = vmul.f32 %v4759_v28, %v4759_v28 }
 0xde5   :  { %v2450_v27 = vpop.permute.xlu0 %2449 }
 0xde6   :  { %v4762_v26 = vsel %vm244_vm5, %v1515_v45, %v2450_v27 }
 0xde7   :  { %v2472_v49 = vmul.f32 %v4762_v26, %v4762_v26 }
 0xde9   :  { %v3457_v56 = vpack.c.bf16 %v2472_v49, %v2471_v47 }
 0xdeb   :  { %3458 = vmatpush3.bf16.msra.mxu1 %v3457_v56 }
 0xdec   :  { %v2452_v2 = vpop.permute.xlu1 %2451  ;;  %3349 = vmatprep.subr.mxu1 %v3626_v4 }
 0xded   :  { %v4770_v1 = vsel %vm244_vm5, %v1516_v20, %v2452_v2 }
 0xdee   :  { %v2473_v21 = vmul.f32 %v4770_v1, %v4770_v1 }
 0xdf0   :  { %3350 = vmatpush3.msra.mxu1 %v2473_v21 }
 0xdf1   :  { %3352 = vmatmul.mubr.msk.f32.vlgmr.msra.gmra.mrb[58].mxu1 %vm302_vm6, %v94_v53  ;;  %3354 = vmatprep.subr.mxu1 %v3626_v4 }
 0xdf2   :  { %3356 = vmatprep.mubr.msk.f32.mxu1 %vm3625_vm3, %v3626_v4 }
 0xec4   :  { %v2543_v34 = vpop.f32.mrb[58].mxu1 }
 0xec5   :  { %3355 = vmatpush3.msk.msra.mxu1 %vm133_vm0, %v2543_v34  ;;  %v3353_v30 = vpop.f32.mrb[59].mxu1 }
 0xec6   :  { %3357 = vmatmul.mubr.msk.f32.vlgmr.msra.gmra.mrb[60].mxu1 %vm1532_vm12, %v87_v32 }
 0xec7   :  { %3359 = vmatprep.mubr.msk.f32.mxu1 %vm3625_vm3, %v3626_v4 }
 0xeca   :  { %3360 = vmatmul.mubr.msk.f32.gmra.mrb[62].mxu1 %vm1532_vm12, %v88_v9 }
 0xecb   :  { %3362 = vmatprep.mubr.msk.f32.mxu1 %vm3625_vm3, %v3626_v4 }
 0xece   :  { %3363 = vmatmul.mubr.msk.f32.gmra.mrb[64].mxu1 %vm1532_vm12, %v89_v36 }
 0xecf   :  { %3365 = vmatprep.mubr.msk.f32.mxu1 %vm3625_vm3, %v3626_v4 }
 0xed2   :  { %3366 = vmatmul.mubr.msk.f32.gmra.mrb[66].mxu1 %vm1532_vm12, %v90_v41 }
 0xed3   :  { %3368 = vmatprep.mubr.msk.f32.mxu1 %vm3625_vm3, %v3626_v4 }
 0xed6   :  { %3369 = vmatmul.mubr.msk.f32.gmra.mrb[68].mxu1 %vm1532_vm12, %v91_v42 }
 0xed7   :  { %3371 = vmatprep.mubr.msk.f32.mxu1 %vm3625_vm3, %v3626_v4 }
 0xeda   :  { %3372 = vmatmul.mubr.msk.f32.gmra.mrb[70].mxu1 %vm1532_vm12, %v92_v31 }
 0xedb   :  { %3374 = vmatprep.mubr.msk.f32.mxu1 %vm3625_vm3, %v3626_v4  ;;  %v4822_v4 = vand.u32 127, %v2692_v11 }
 0xedd   :  { %vm2694_vm15 = vcmp.lt.s32.totalorder %v4822_v4, 32 }
 0xede   :  { %3375 = vmatmul.mubr.msk.f32.gmra.mrb[72].mxu1 %vm1532_vm12, %v93_v54 }
 0xf99   :  { %v2637_v58 = vpop.f32.mrb[60].mxu1 }
 0xf9a   :  { %v2671_v22 = vmax.f32 %v2637_v58, 1e-24  ;;  %v3358_v60 = vpop.f32.mrb[61].mxu1 }
 0xf9c   :  { %3548 = vrsqrt.f32 %v2671_v22 }
 0xf9d   :  { %v2642_v6 = vpop.f32.mrb[62].mxu1 }
 0xf9e   :  { %v2672_v10 = vmax.f32 %v2642_v6, 1e-24  ;;  %v3361_v24 = vpop.f32.mrb[63].mxu1 }
 0xfa0   :  { %3550 = vrsqrt.f32 %v2672_v10 }
 0xfa1   :  { %v2647_v29 = vpop.f32.mrb[64].mxu1 }
 0xfa2   :  { %v2673_v44 = vmax.f32 %v2647_v29, 1e-24  ;;  %v3364_v52 = vpop.f32.mrb[65].mxu1 }
 0xfa4   :  { %3552 = vrsqrt.f32 %v2673_v44 }
 0xfa5   :  { %v2652_v7 = vpop.f32.mrb[66].mxu1 }
 0xfa6   :  { %v3549_v40 = vpop.eup %3548  ;;  %v2674_v46 = vmax.f32 %v2652_v7, 1e-24  ;;  %v3367_v15 = vpop.f32.mrb[67].mxu1 }
 0xfa7   :  { %v4825_v3 = vmul.f32 %v3549_v40, %v4734_v61 }
 0xfa8   :  { %3554 = vrsqrt.f32 %v2674_v46 }
 0xfa9   :  { %v2657_v59 = vpop.f32.mrb[68].mxu1  ;;  %v2695_v33 = vmul.f32 %v4825_v3, %v4825_v3 }
 0xfaa   :  { %v3551_v63 = vpop.eup %3550  ;;  %v2675_v17 = vmax.f32 %v2657_v59, 1e-24  ;;  %v3370_v57 = vpop.f32.mrb[69].mxu1 }
 0xfab   :  { %v2702_v25 = vsel %vm2694_vm15, %v2695_v33, 0.0  ;;  %v4833_v48 = vmul.f32 %v3551_v63, %v4737_v14  ;;  %v2730_v8 = vsel %vm2694_vm15, 0.0, %v2695_v33 }
 0xfac   :  { %3556 = vrsqrt.f32 %v2675_v17  ;;  %v2709_v61 = vsel %vm894_vm11, %v2702_v25, 0.0  ;;  %v2737_v50 = vsel %vm894_vm11, %v2730_v8, 0.0 }
 0xfad   :  { %2710 = vadd.xlane.f32.xlu0 %v2709_v61  ;;  %v2662_v5 = vpop.f32.mrb[70].mxu1  ;;  %v2696_v38 = vmul.f32 %v4833_v48, %v4833_v48 }
 0xfae   :  { %v3553_v35 = vpop.eup %3552  ;;  %v2676_v39 = vmax.f32 %v2662_v5, 1e-24  ;;  %v3373_v62 = vpop.f32.mrb[71].mxu1 }
 0xfaf   :  { %v2703_v43 = vsel %vm2694_vm15, %v2696_v38, 0.0  ;;  %v4843_v14 = vmul.f32 %v3553_v35, %v4745_v18  ;;  %v2731_v16 = vsel %vm2694_vm15, 0.0, %v2696_v38 }
 0xfb0   :  { %3558 = vrsqrt.f32 %v2676_v39  ;;  %v2712_v0 = vsel %vm894_vm11, %v2703_v43, 0.0  ;;  %v2740_v27 = vsel %vm894_vm11, %v2731_v16, 0.0 }
 0xfb1   :  { %2738 = vadd.xlane.f32.xlu0 %v2737_v50  ;;  %2713 = vadd.xlane.f32.xlu1 %v2712_v0  ;;  %v2667_v13 = vpop.f32.mrb[72].mxu1  ;;  %v2697_v55 = vmul.f32 %v4843_v14, %v4843_v14 }
 0xfb2   :  { %v3555_v37 = vpop.eup %3554  ;;  %v2677_v19 = vmax.f32 %v2667_v13, 1e-24  ;;  %v3376_v23 = vpop.f32.mrb[73].mxu1 }
 0xfb3   :  { %v2704_v18 = vsel %vm2694_vm15, %v2697_v55, 0.0  ;;  %v4854_v45 = vmul.f32 %v3555_v37, %v4750_v12  ;;  %v2732_v47 = vsel %vm2694_vm15, 0.0, %v2697_v55 }
 0xfb4   :  { %3560 = vrsqrt.f32 %v2677_v19  ;;  %v2715_v51 = vsel %vm894_vm11, %v2704_v18, 0.0  ;;  %v2743_v2 = vsel %vm894_vm11, %v2732_v47, 0.0 }
 0xfb5   :  { %2741 = vadd.xlane.f32.xlu1 %v2740_v27  ;;  %2716 = vadd.xlane.f32.xlu0 %v2715_v51  ;;  %v2698_v49 = vmul.f32 %v4854_v45, %v4854_v45 }
 0xfb6   :  { %v3557_v56 = vpop.eup %3556 }
 0xfb7   :  { %v2733_v20 = vsel %vm2694_vm15, 0.0, %v2698_v49  ;;  %v4865_v12 = vmul.f32 %v3557_v56, %v4759_v28  ;;  %v2705_v53 = vsel %vm2694_vm15, %v2698_v49, 0.0 }
 0xfb8   :  { %v2746_v21 = vsel %vm894_vm11, %v2733_v20, 0.0  ;;  %v2718_v28 = vsel %vm894_vm11, %v2705_v53, 0.0 }
 0xfb9   :  { %2744 = vadd.xlane.f32.xlu0 %v2743_v2  ;;  %2747 = vadd.xlane.f32.xlu1 %v2746_v21  ;;  %v2699_v32 = vmul.f32 %v4865_v12, %v4865_v12 }
 0xfba   :  { %v3559_v34 = vpop.eup %3558 }
 0xfbb   :  { %v2706_v30 = vsel %vm2694_vm15, %v2699_v32, 0.0  ;;  %v4876_v9 = vmul.f32 %v3559_v34, %v4762_v26  ;;  %v2734_v41 = vsel %vm2694_vm15, 0.0, %v2699_v32 }
 0xfbc   :  { %v2721_v36 = vsel %vm894_vm11, %v2706_v30, 0.0  ;;  %v2749_v58 = vsel %vm894_vm11, %v2734_v41, 0.0 }
 0xfbd   :  { %2719 = vadd.xlane.f32.xlu0 %v2718_v28  ;;  %2722 = vadd.xlane.f32.xlu1 %v2721_v36  ;;  %v2700_v42 = vmul.f32 %v4876_v9, %v4876_v9 }
 0xfbe   :  { %v3561_v31 = vpop.eup %3560 }
 0xfbf   :  { %v4885_v54 = vmul.f32 %v3561_v31, %v4770_v1  ;;  %v2707_v26 = vsel %vm2694_vm15, %v2700_v42, 0.0  ;;  %v2735_v24 = vsel %vm2694_vm15, 0.0, %v2700_v42 }
 0xfc0   :  { %v2724_v6 = vsel %vm894_vm11, %v2707_v26, 0.0  ;;  %v2752_v29 = vsel %vm894_vm11, %v2735_v24, 0.0 }
 0xfc1   :  { %2750 = vadd.xlane.f32.xlu0 %v2749_v58  ;;  %v2701_v22 = vmul.f32 %v4885_v54, %v4885_v54 }
 0xfc3   :  { %v2708_v60 = vsel %vm2694_vm15, %v2701_v22, 0.0  ;;  %v2736_v1 = vsel %vm2694_vm15, 0.0, %v2701_v22 }
 0xfc4   :  { %v2727_v10 = vsel %vm894_vm11, %v2708_v60, 0.0  ;;  %v2755_v11 = vsel %vm894_vm11, %v2736_v1, 0.0 }
 0xfc5   :  { %2725 = vadd.xlane.f32.xlu0 %v2724_v6  ;;  %2728 = vadd.xlane.f32.xlu1 %v2727_v10 }
 0xfc9   :  { %2756 = vadd.xlane.f32.xlu0 %v2755_v11  ;;  %2753 = vadd.xlane.f32.xlu1 %v2752_v29 }
0x103a   :  { %v2711_v44 = vpop.xlane.xlu0 %2710 }
0x103b   :  { %v2758_v52 = vmax.f32 %v2711_v44, 1e-24 }
0x103d   :  { %3562 = vrsqrt.f32 %v2758_v52 }
0x103e   :  { %v2739_v7 = vpop.xlane.xlu0 %2738  ;;  %v2714_v40 = vpop.xlane.xlu1 %2713 }
0x103f   :  { %v2772_v46 = vmax.f32 %v2739_v7, 1e-24  ;;  %v2759_v15 = vmax.f32 %v2714_v40, 1e-24 }
0x1041   :  { %3564 = vrsqrt.f32 %v2772_v46 }
0x1042   :  { %v2742_v59 = vpop.xlane.xlu1 %2741  ;;  %v2717_v33 = vpop.xlane.xlu0 %2716  ;;  %3566 = vrsqrt.f32 %v2759_v15 }
0x1043   :  { %v2773_v63 = vmax.f32 %v2742_v59, 1e-24  ;;  %v2760_v17 = vmax.f32 %v2717_v33, 1e-24 }
0x1045   :  { %3568 = vrsqrt.f32 %v2773_v63 }
0x1046   :  { %v2745_v57 = vpop.xlane.xlu0 %2744  ;;  %v2748_v25 = vpop.xlane.xlu1 %2747  ;;  %3570 = vrsqrt.f32 %v2760_v17 }
0x1047   :  { %v2774_v61 = vmax.f32 %v2745_v57, 1e-24  ;;  %v2775_v5 = vmax.f32 %v2748_v25, 1e-24  ;;  %v3563_v8 = vpop.eup %3562 }
0x1049   :  { %3572 = vrsqrt.f32 %v2774_v61 }
0x104a   :  { %v2720_v38 = vpop.xlane.xlu0 %2719  ;;  %v2723_v35 = vpop.xlane.xlu1 %2722  ;;  %3574 = vrsqrt.f32 %v2775_v5 }
0x104b   :  { %v3565_v39 = vpop.eup %3564  ;;  %v2761_v62 = vmax.f32 %v2720_v38, 1e-24  ;;  %v2762_v50 = vmax.f32 %v2723_v35, 1e-24 }
0x104c   :  { %v2786_v43 = vsel %vm2694_vm15, %v3563_v8, %v3565_v39  ;;  %v3567_v13 = vpop.eup %3566 }
0x104d   :  { %v2793_v0 = vmul.f32 %v2786_v43, %v4825_v3  ;;  %3576 = vrsqrt.f32 %v2761_v62 }
0x104e   :  { %v2751_v16 = vpop.xlane.xlu0 %2750  ;;  %3578 = vrsqrt.f32 %v2762_v50 }
0x104f   :  { %v3569_v55 = vpop.eup %3568  ;;  %v2800_v37 = vsel %vm894_vm11, %v2793_v0, 0.0  ;;  %v2776_v19 = vmax.f32 %v2751_v16, 1e-24 }
0x1050   :  { %2807 = vst [vmem:[#allocation2] sm:$0xff] %v2800_v37  ;;  %v2787_v23 = vsel %vm2694_vm15, %v3567_v13, %v3569_v55  ;;  %v3571_v27 = vpop.eup %3570 }
0x1051   :  { %v2794_v18 = vmul.f32 %v2787_v23, %v4833_v48  ;;  %3580 = vrsqrt.f32 %v2776_v19 }
0x1052   :  { %v2726_v51 = vpop.xlane.xlu0 %2725  ;;  %v2729_v47 = vpop.xlane.xlu1 %2728 }
0x1053   :  { %v3573_v49 = vpop.eup %3572  ;;  %v2801_v3 = vsel %vm894_vm11, %v2794_v18, 0.0  ;;  %v2763_v56 = vmax.f32 %v2726_v51, 1e-24  ;;  %v2764_v2 = vmax.f32 %v2729_v47, 1e-24 }
0x1054   :  { %2808 = vst [vmem:[#allocation2 + $0x8] sm:$0xff] %v2801_v3  ;;  %v2788_v20 = vsel %vm2694_vm15, %v3571_v27, %v3573_v49  ;;  %v3575_v53 = vpop.eup %3574 }
0x1055   :  { %v2795_v21 = vmul.f32 %v2788_v20, %v4843_v14  ;;  %3582 = vrsqrt.f32 %v2763_v56 }
0x1056   :  { %v2757_v32 = vpop.xlane.xlu0 %2756  ;;  %v2754_v34 = vpop.xlane.xlu1 %2753  ;;  %3584 = vrsqrt.f32 %v2764_v2 }
0x1057   :  { %v3577_v30 = vpop.eup %3576  ;;  %v2802_v48 = vsel %vm894_vm11, %v2795_v21, 0.0  ;;  %v2778_v28 = vmax.f32 %v2757_v32, 1e-24  ;;  %v2777_v36 = vmax.f32 %v2754_v34, 1e-24 }
0x1058   :  { %2809 = vst [vmem:[#allocation2 + $0x10] sm:$0xff] %v2802_v48  ;;  %v2789_v41 = vsel %vm2694_vm15, %v3577_v30, %v3575_v53  ;;  %v3579_v31 = vpop.eup %3578 }
0x1059   :  { %v2796_v42 = vmul.f32 %v2789_v41, %v4854_v45  ;;  %3586 = vrsqrt.f32 %v2778_v28 }
0x105a   :  { %3588 = vrsqrt.f32 %v2777_v36 }
0x105b   :  { %v3581_v14 = vpop.eup %3580  ;;  %v2803_v58 = vsel %vm894_vm11, %v2796_v42, 0.0 }
0x105c   :  { %2810 = vst [vmem:[#allocation2 + $0x18] sm:$0xff] %v2803_v58  ;;  %v2790_v26 = vsel %vm2694_vm15, %v3579_v31, %v3581_v14 }
0x105d   :  { %v2797_v22 = vmul.f32 %v2790_v26, %v4865_v12 }
0x105f   :  { %v2804_v60 = vsel %vm894_vm11, %v2797_v22, 0.0  ;;  %v3583_v6 = vpop.eup %3582 }
0x1060   :  { %2811 = vst [vmem:[#allocation2 + $0x20] sm:$0xff] %v2804_v60  ;;  %v3585_v10 = vpop.eup %3584 }
0x1063   :  { %v3587_v1 = vpop.eup %3586 }
0x1064   :  { %v3589_v45 = vpop.eup %3588  ;;  %v2792_v24 = vsel %vm2694_vm15, %v3585_v10, %v3587_v1 }
0x1065   :  { %v2799_v11 = vmul.f32 %v2792_v24, %v4885_v54  ;;  %v2791_v29 = vsel %vm2694_vm15, %v3583_v6, %v3589_v45 }
0x1066   :  { %v2798_v44 = vmul.f32 %v2791_v29, %v4876_v9 }
0x1067   :  { %v2806_v12 = vsel %vm894_vm11, %v2799_v11, 0.0 }
0x1068   :  { %2813 = vst [vmem:[#allocation2 + $0x30] sm:$0xff] %v2806_v12  ;;  %v2805_v52 = vsel %vm894_vm11, %v2798_v44, 0.0 }
0x1069   :  { %2812 = vst [vmem:[#allocation2 + $0x28] sm:$0xff] %v2805_v52 }
0x106a   :  { %3610 = shalt.err (!%p3607_p4)
}
0x106b   :  { %s3611_s8 = scalar_lea.hbm %s4966_s24, 896 }
0x106c   :  { %p3612_p5 = scmp.ne.s32.totalorder %s4966_s24, %s3611_s8  ;;  %p3615_p6 = scmp.lt.u32.totalorder %s3611_s8, %s4966_s24 }
0x106e   :  { %p3617_p7 = pnand %p3615_p6, %p3612_p5 }
0x1070   :  { %3620 = shalt.err (!%p3617_p7)
}
0x1071   :  { %s3632_s5 = smov 128   ;;  %s3633_s17 = smov 8  }
0x1072   :  { %2825 = dma.vmem_to_hbm [thread:$0]  %s2820_s7, 896, %s4966_s24, [#allocation3], %s3632_s5, %s3632_s5, %s3633_s17  }
0x1073   :  { %3621 = dma.done.wait [#allocation3], 896  }
0x1074   :  { %3622 = vsyncadd [#allocation3], 4294966400 }
0x1075   :  { %2829 = vsyncpa [#allocation3], 1 }

</bundles_post_ra>
